<compile_context>
chip_gen: v6e
topology: v6e:2x2x1
jax: 0.10.0
libtpu: 0.0.40
codegen_flags: <defaults>
</compile_context>

<pallas_src>
import functools
import math

import jax
import jax.numpy as jnp
from jax import lax
from jax.experimental import pallas as pl
from jax.experimental.pallas import tpu as pltpu


# ----------------------------- LSTM kernel ----------------------------------
def _lstm_kernel(T, B, H, x_ref, wih_ref, whh_ref, b_ref, out_ref):
    # x_ref:   (T*B, E)  bf16, time-major flattened input (rows t*B..t*B+B-1)
    # wih_ref: (E, 4H)   bf16 packed gate weights, column order i|f|g|o
    # whh_ref: (H, 4H)   bf16 packed recurrent weights
    # b_ref:   (1, 4H)   f32 combined bias (b_ih + b_hh)
    # out_ref: (T*B, H)  f32 time-major hidden states
    # Hoisted input projection for ALL timesteps: one fused matmul.
    xp = (jnp.dot(x_ref[...], wih_ref[...], preferred_element_type=jnp.float32)
          + b_ref[...])                                        # (T*B, 4H) f32
    whh = whh_ref[...]                                         # (H, 4H) bf16

    h = jnp.zeros((B, H), jnp.float32)
    c = jnp.zeros((B, H), jnp.float32)
    for t in range(T):                                         # static unroll
        gates = xp[t * B:(t + 1) * B, :] + jnp.dot(
            h.astype(jnp.bfloat16), whh, preferred_element_type=jnp.float32)
        i_g = jax.nn.sigmoid(gates[:, 0 * H:1 * H])
        f_g = jax.nn.sigmoid(gates[:, 1 * H:2 * H])
        g_g = jnp.tanh(gates[:, 2 * H:3 * H])
        o_g = jax.nn.sigmoid(gates[:, 3 * H:4 * H])
        c = f_g * c + i_g * g_g
        h = o_g * jnp.tanh(c)
        out_ref[t * B:(t + 1) * B, :] = h


def lstm_forward_pair(x2, wih2, whh2, b2, *, B, T):
    # x2: (2, T*B, E) bf16 (both directions stacked); weights stacked on axis 0.
    E = x2.shape[-1]
    H = whh2.shape[1]
    return pl.pallas_call(
        functools.partial(_lstm_kernel, T, B, H),
        out_shape=jax.ShapeDtypeStruct((2, T * B, H), jnp.float32),
        grid=(2,),
        in_specs=[
            pl.BlockSpec((None, T * B, E), lambda d: (d, 0, 0)),
            pl.BlockSpec((None, E, 4 * H), lambda d: (d, 0, 0)),
            pl.BlockSpec((None, H, 4 * H), lambda d: (d, 0, 0)),
            pl.BlockSpec((None, 1, 4 * H), lambda d: (d, 0, 0)),
        ],
        out_specs=pl.BlockSpec((None, T * B, H), lambda d: (d, 0, 0)),
        compiler_params=pltpu.CompilerParams(
            dimension_semantics=("parallel",)),
    )(x2, wih2, whh2, b2)


# --------------------- fused encoder stack + head kernel ---------------------
def _layer_norm(x, g, b, eps=1e-5):
    mu = jnp.mean(x, axis=-1, keepdims=True)
    var = jnp.mean(jnp.square(x - mu), axis=-1, keepdims=True)
    return (x - mu) * lax.rsqrt(var + eps) * g + b


def _encoder_head_kernel(num_layers, nhead, dff_chunk,
                         x_ref, hl_ref, hr_ref,
                         wqkv_ref, bqkv_ref, wo_ref, bo_ref,
                         w1_ref, b1_ref, w2_ref, b2_ref,
                         g1_ref, be1_ref, g2_ref, be2_ref,
                         convw_ref, convb_ref, dw_ref, db_ref, out_ref):
    B, S, E = x_ref.shape
    hd = E // nhead
    scale = 1.0 / math.sqrt(hd)
    dff = w1_ref.shape[-1]

    xf = x_ref[...].reshape(B * S, E)                     # flattened batch, f32

    for l in range(num_layers):                           # static layer loop
        # ---- fused QKV projection: one (B*S,E)@(E,3E) matmul ----
        qkv = (jnp.dot(xf.astype(jnp.bfloat16), wqkv_ref[l],
                       preferred_element_type=jnp.float32)
               + bqkv_ref[l])                             # (B*S, 3E)

        # ---- per-head attention (tiny score/AV matmuls, f32) ----
        heads = []
        for h in range(nhead):
            q_h = qkv[:, h * hd:(h + 1) * hd].reshape(B, S, hd) * scale
            k_h = qkv[:, E + h * hd:E + (h + 1) * hd].reshape(B, S, hd)
            v_h = qkv[:, 2 * E + h * hd:2 * E + (h + 1) * hd].reshape(B, S, hd)
            s = jnp.einsum('bqd,bkd->bqk', q_h, k_h,
                           preferred_element_type=jnp.float32)
            s = s - jnp.max(s, axis=-1, keepdims=True)
            e = jnp.exp(s)
            p = e / jnp.sum(e, axis=-1, keepdims=True)
            o_h = jnp.einsum('bqk,bkd->bqd', p, v_h,
                             preferred_element_type=jnp.float32)
            heads.append(o_h.reshape(B * S, hd))
        o_cat = jnp.concatenate(heads, axis=-1)           # (B*S, E)

        # ---- fused output projection: one (B*S,E)@(E,E) matmul ----
        attn = (jnp.dot(o_cat.astype(jnp.bfloat16), wo_ref[l],
                        preferred_element_type=jnp.float32) + bo_ref[l])

        # post-norm (norm_first=False), dropout disabled (inference)
        y = _layer_norm(xf + attn, g1_ref[l], be1_ref[l])

        # ---- FFN, dff tiled in chunks to bound vreg pressure ----
        y_bf = y.astype(jnp.bfloat16)
        ff = jnp.zeros((B * S, E), jnp.float32)
        for c0 in range(0, dff, dff_chunk):
            h1 = (jnp.dot(y_bf, w1_ref[l, :, c0:c0 + dff_chunk],
                          preferred_element_type=jnp.float32)
                  + b1_ref[l, :, c0:c0 + dff_chunk])
            h1 = jnp.maximum(h1, 0.0).astype(jnp.bfloat16)   # ReLU
            ff = ff + jnp.dot(h1, w2_ref[l, c0:c0 + dff_chunk, :],
                              preferred_element_type=jnp.float32)
        ff = ff + b2_ref[l]

        xf = _layer_norm(y + ff, g2_ref[l], be2_ref[l])

    # ---- head: Conv1d(3T,1,1) as one block-diagonal matmul + dense ----
    h_en = (jnp.dot(convw_ref[...], xf, preferred_element_type=jnp.float32)
            + convb_ref[...])                             # (B, E)
    h_cat = jnp.concatenate([hl_ref[...], hr_ref[...], h_en], axis=-1)  # (B,3H)
    out_ref[...] = (jnp.dot(h_cat, dw_ref[...],
                            preferred_element_type=jnp.float32)
                    + db_ref[...])                        # (B, P)


def encoder_head_forward(x_en, h_n_l, h_n_r, conv_full, params, nhead):
    B, S, E = x_en.shape
    P = params["dense_b"].shape[-1]
    num_layers = params["enc_wqkv"].shape[0]
    dff = params["enc_w1"].shape[-1]
    dff_chunk = 512 if dff % 512 == 0 else dff
    vmem = pl.BlockSpec(memory_space=pltpu.MemorySpace.VMEM)
    return pl.pallas_call(
        functools.partial(_encoder_head_kernel, num_layers, nhead, dff_chunk),
        out_shape=jax.ShapeDtypeStruct((B, P), jnp.float32),
        in_specs=[vmem] * 19,
        out_specs=vmem,
    )(x_en, h_n_l, h_n_r,
      params["enc_wqkv"], params["enc_bqkv"], params["enc_wo"], params["enc_bo"],
      params["enc_w1"], params["enc_b1"], params["enc_w2"], params["enc_b2"],
      params["enc_g1"], params["enc_be1"], params["enc_g2"], params["enc_be2"],
      conv_full, params["conv_b"], params["dense_w"], params["dense_b"])


# ----------------------------- full forward ----------------------------------
def tdlc_transformer_forward(params, x_l_tok, x_r_tok, x_tok, nhead=6):
    B, T = x_l_tok.shape
    emb = params["embedding"]
    E = emb.shape[-1]
    H = params["lstm_whh"].shape[1]

    # embedding gather + length computation: glue in plain JAX
    e_l, e_r, e_x = emb[x_l_tok], emb[x_r_tok], emb[x_tok]
    len_l = jnp.sum(x_l_tok != 0, axis=-1)
    len_r = jnp.sum(x_r_tok != 0, axis=-1)

    # both LSTM directions in one pallas_call (grid=(2,), "parallel")
    x2 = jnp.stack([e_l, e_r], axis=0)                              # (2,B,T,E)
    x2 = jnp.transpose(x2, (0, 2, 1, 3)).reshape(2, T * B, E)       # time-major
    out2 = lstm_forward_pair(x2.astype(jnp.bfloat16),
                             params["lstm_wih"], params["lstm_whh"],
                             params["lstm_b"], B=B, T=T)            # (2,T*B,H)
    out2 = jnp.transpose(out2.reshape(2, T, B, H), (0, 2, 1, 3))    # (2,B,T,H)
    out_l, out_r = out2[0], out2[1]

    x_en = jnp.concatenate([out_l, out_r, e_x], axis=1)             # (B,3T,E)

    # gather last non-pad hidden states; (len-1) % T reproduces PyTorch's
    # negative-index wrap when len == 0
    idx_l = (len_l - 1) % T
    idx_r = (len_r - 1) % T
    h_n_l = jnp.take_along_axis(out_l, idx_l[:, None, None], axis=1)[:, 0, :]
    h_n_r = jnp.take_along_axis(out_r, idx_r[:, None, None], axis=1)[:, 0, :]

    # Conv1d(3T,1,1) over all B at once: block-diagonal (B, B*3T) weight
    conv_full = jnp.kron(jnp.eye(B, dtype=jnp.float32), params["conv_w"])

    return encoder_head_forward(x_en, h_n_l, h_n_r, conv_full, params, nhead)


# ------------------------- deterministic parameters --------------------------
def init_params(key, vocab, E, H, T, nhead, dff, num_layers, P):
    keys = iter(jax.random.split(key, 128))

    def w(shape, scale=0.05):
        return jax.random.normal(next(keys), shape, jnp.float32) * scale

    embedding = w((vocab, E), 0.5)

    def lstm_params():
        wih = w((4 * H, E))                       # PyTorch weight_ih (4H,E) i,f,g,o
        whh = w((4 * H, H))                       # PyTorch weight_hh (4H,H)
        bih = w((4 * H,))
        bhh = w((4 * H,))
        return (jnp.transpose(wih),               # (E, 4H) packed gates
                jnp.transpose(whh),               # (H, 4H)
                (bih + bhh).reshape(1, 4 * H))

    wih_l, whh_l, b_l = lstm_params()
    wih_r, whh_r, b_r = lstm_params()

    def encoder_layer_params():
        in_w = w((3 * E, E))                      # in_proj_weight
        in_b = w((3 * E,))                        # in_proj_bias
        out_w = w((E, E))                         # out_proj.weight
        out_b = w((E,))
        w1 = w((dff, E))                          # linear1.weight
        b1 = w((dff,))
        w2 = w((E, dff))                          # linear2.weight
        b2 = w((E,))
        return dict(
            wqkv=jnp.transpose(in_w),             # (E, 3E), cols q|k|v head-major
            bqkv=in_b.reshape(1, 3 * E),
            wo=jnp.transpose(out_w),              # (E, E)
            bo=out_b.reshape(1, E),
            w1=jnp.transpose(w1),                 # (E, dff)
            b1=b1.reshape(1, dff),
            w2=jnp.transpose(w2),                 # (dff, E)
            b2=b2.reshape(1, E),
            g1=jnp.ones((1, E), jnp.float32), be1=jnp.zeros((1, E), jnp.float32),
            g2=jnp.ones((1, E), jnp.float32), be2=jnp.zeros((1, E), jnp.float32))

    layers = [encoder_layer_params() for _ in range(num_layers)]

    def stacked(name, dtype=None):
        a = jnp.stack([lp[name] for lp in layers])
        return a.astype(dtype) if dtype is not None else a

    dense_w = w((P, 3 * H))                       # nn.Linear(3H, P).weight

    return dict(
        embedding=embedding,
        lstm_wih=jnp.stack([wih_l, wih_r]).astype(jnp.bfloat16),   # (2,E,4H)
        lstm_whh=jnp.stack([whh_l, whh_r]).astype(jnp.bfloat16),   # (2,H,4H)
        lstm_b=jnp.stack([b_l, b_r]),                              # (2,1,4H) f32
        enc_wqkv=stacked("wqkv", jnp.bfloat16), enc_bqkv=stacked("bqkv"),
        enc_wo=stacked("wo", jnp.bfloat16), enc_bo=stacked("bo"),
        enc_w1=stacked("w1", jnp.bfloat16), enc_b1=stacked("b1"),
        enc_w2=stacked("w2", jnp.bfloat16), enc_b2=stacked("b2"),
        enc_g1=stacked("g1"), enc_be1=stacked("be1"),
        enc_g2=stacked("g2"), enc_be2=stacked("be2"),
        conv_w=w((1, 3 * T)),                     # Conv1d weight (1,3T,1) squeezed
        conv_b=w((1, 1)),
        dense_w=jnp.transpose(dense_w),           # (3H, P)
        dense_b=w((P,)).reshape(1, P),
    )


if __name__ == "__main__":
    # small shapes: batch=2, max_seq_len=8, embed_dim=hidden_dim=48 (nhead=6),
    # polarities=3, coder_num_layers=2, dim_feedforward=2048 (PyTorch default)
    B, T, E, H = 2, 8, 48, 48
    nhead, dff, num_layers, P, vocab = 6, 2048, 2, 3, 20

    key = jax.random.PRNGKey(0)
    kp, kl, kr, kx = jax.random.split(key, 4)
    params = init_params(kp, vocab, E, H, T, nhead, dff, num_layers, P)

    x_l_tok = jax.random.randint(kl, (B, T), 1, vocab).at[:, 5:].set(0)
    x_r_tok = jax.random.randint(kr, (B, T), 1, vocab).at[:, 6:].set(0)
    x_tok = jax.random.randint(kx, (B, T), 1, vocab)

    out = tdlc_transformer_forward(params, x_l_tok, x_r_tok, x_tok, nhead=nhead)
    out = jax.block_until_ready(out)
    assert out.shape == (B, P), out.shape
    assert bool(jnp.all(jnp.isfinite(out)))
    print("KERNEL_OK")
</pallas_src>

<mosaic_0001>
module attributes {stable_mosaic.version = 11 : i64} {
  func.func @_lstm_kernel(%arg0: i32, %arg1: memref<1x16x48xbf16, #tpu.memory_space<vmem>>, %arg2: memref<1x48x192xbf16, #tpu.memory_space<vmem>>, %arg3: memref<1x48x192xbf16, #tpu.memory_space<vmem>>, %arg4: memref<1x1x192xf32, #tpu.memory_space<vmem>>, %arg5: memref<1x16x48xf32, #tpu.memory_space<vmem>>) attributes {dimension_semantics = [#tpu.dimension_semantics<parallel>], iteration_bounds = array<i64: 2>, scalar_prefetch = 0 : i64, scratch_operands = 0 : i64, tpu.core_type = #tpu.core_type<tc>, window_params = [{transform_indices = @transform_0, window_bounds = array<i64: 1, 16, 48>}, {transform_indices = @transform_1, window_bounds = array<i64: 1, 48, 192>}, {transform_indices = @transform_2, window_bounds = array<i64: 1, 48, 192>}, {transform_indices = @transform_3, window_bounds = array<i64: 1, 1, 192>}, {transform_indices = @transform_4, window_bounds = array<i64: 1, 16, 48>}]} {
    %c0 = arith.constant 0 : index
    %c0_0 = arith.constant 0 : index
    %c0_1 = arith.constant 0 : index
    %0 = vector.load %arg1[%c0, %c0_0, %c0_1] : memref<1x16x48xbf16, #tpu.memory_space<vmem>>, vector<1x16x48xbf16>
    %1 = vector.shape_cast %0 : vector<1x16x48xbf16> to vector<16x48xbf16>
    %c0_2 = arith.constant 0 : index
    %c0_3 = arith.constant 0 : index
    %c0_4 = arith.constant 0 : index
    %2 = vector.load %arg2[%c0_2, %c0_3, %c0_4] : memref<1x48x192xbf16, #tpu.memory_space<vmem>>, vector<1x48x192xbf16>
    %3 = vector.shape_cast %2 : vector<1x48x192xbf16> to vector<48x192xbf16>
    %cst = arith.constant dense<0.000000e+00> : vector<16x192xf32>
    %4 = tpu.matmul %1, %3, %cst {dimension_numbers = #tpu.dot_dimension_numbers<[1], [0], [0], [1], [0, 0, 1, 1], [], []>} : vector<16x48xbf16>, vector<48x192xbf16>, vector<16x192xf32> -> vector<16x192xf32>
    %c0_5 = arith.constant 0 : index
    %c0_6 = arith.constant 0 : index
    %c0_7 = arith.constant 0 : index
    %5 = vector.load %arg4[%c0_5, %c0_6, %c0_7] : memref<1x1x192xf32, #tpu.memory_space<vmem>>, vector<1x1x192xf32>
    %6 = vector.shape_cast %5 : vector<1x1x192xf32> to vector<1x192xf32>
    %7 = vector.broadcast %6 : vector<1x192xf32> to vector<16x192xf32>
    %8 = arith.addf %4, %7 : vector<16x192xf32>
    %c0_8 = arith.constant 0 : index
    %c0_9 = arith.constant 0 : index
    %c0_10 = arith.constant 0 : index
    %9 = vector.load %arg3[%c0_8, %c0_9, %c0_10] : memref<1x48x192xbf16, #tpu.memory_space<vmem>>, vector<1x48x192xbf16>
    %10 = vector.shape_cast %9 : vector<1x48x192xbf16> to vector<48x192xbf16>
    %cst_11 = arith.constant 0.000000e+00 : f32
    %11 = vector.broadcast %cst_11 : f32 to vector<2x48xf32>
    %cst_12 = arith.constant 0.000000e+00 : f32
    %12 = vector.broadcast %cst_12 : f32 to vector<2x48xf32>
    %13 = vector.extract_strided_slice %8 {offsets = [0, 0], sizes = [2, 192], strides = [1, 1]} : vector<16x192xf32> to vector<2x192xf32>
    %14 = arith.truncf %11 : vector<2x48xf32> to vector<2x48xbf16>
    %cst_13 = arith.constant dense<0.000000e+00> : vector<2x192xf32>
    %15 = tpu.matmul %14, %10, %cst_13 {dimension_numbers = #tpu.dot_dimension_numbers<[1], [0], [0], [1], [0, 0, 1, 1], [], []>} : vector<2x48xbf16>, vector<48x192xbf16>, vector<2x192xf32> -> vector<2x192xf32>
    %16 = arith.addf %13, %15 : vector<2x192xf32>
    %17 = vector.extract_strided_slice %16 {offsets = [0, 0], sizes = [2, 48], strides = [1, 1]} : vector<2x192xf32> to vector<2x48xf32>
    %18 = arith.negf %17 : vector<2x48xf32>
    %19 = math.exp %18 : vector<2x48xf32>
    %cst_14 = arith.constant 1.000000e+00 : f32
    %20 = vector.broadcast %cst_14 : f32 to vector<2x48xf32>
    %21 = arith.addf %20, %19 : vector<2x48xf32>
    %22 = arith.divf %20, %21 : vector<2x48xf32>
    %23 = vector.extract_strided_slice %16 {offsets = [0, 48], sizes = [2, 48], strides = [1, 1]} : vector<2x192xf32> to vector<2x48xf32>
    %24 = arith.negf %23 : vector<2x48xf32>
    %25 = math.exp %24 : vector<2x48xf32>
    %cst_15 = arith.constant 1.000000e+00 : f32
    %26 = vector.broadcast %cst_15 : f32 to vector<2x48xf32>
    %27 = arith.addf %26, %25 : vector<2x48xf32>
    %28 = arith.divf %26, %27 : vector<2x48xf32>
    %29 = vector.extract_strided_slice %16 {offsets = [0, 96], sizes = [2, 48], strides = [1, 1]} : vector<2x192xf32> to vector<2x48xf32>
    %30 = math.tanh %29 : vector<2x48xf32>
    %31 = vector.extract_strided_slice %16 {offsets = [0, 144], sizes = [2, 48], strides = [1, 1]} : vector<2x192xf32> to vector<2x48xf32>
    %32 = arith.negf %31 : vector<2x48xf32>
    %33 = math.exp %32 : vector<2x48xf32>
    %cst_16 = arith.constant 1.000000e+00 : f32
    %34 = vector.broadcast %cst_16 : f32 to vector<2x48xf32>
    %35 = arith.addf %34, %33 : vector<2x48xf32>
    %36 = arith.divf %34, %35 : vector<2x48xf32>
    %37 = arith.mulf %28, %12 : vector<2x48xf32>
    %38 = arith.mulf %22, %30 : vector<2x48xf32>
    %39 = arith.addf %37, %38 : vector<2x48xf32>
    %40 = math.tanh %39 : vector<2x48xf32>
    %41 = arith.mulf %36, %40 : vector<2x48xf32>
    %c0_17 = arith.constant 0 : index
    %c0_18 = arith.constant 0 : index
    %c0_19 = arith.constant 0 : index
    %42 = vector.load %arg5[%c0_17, %c0_18, %c0_19] : memref<1x16x48xf32, #tpu.memory_space<vmem>>, vector<1x2x48xf32>
    %43 = vector.shape_cast %42 : vector<1x2x48xf32> to vector<2x48xf32>
    %44 = vector.shape_cast %41 : vector<2x48xf32> to vector<1x2x48xf32>
    tpu.vector_store %arg5[%c0_17, %c0_18, %c0_19], %44 {strides = array<i32>} : memref<1x16x48xf32, #tpu.memory_space<vmem>>, vector<1x2x48xf32>,
    %45 = vector.extract_strided_slice %8 {offsets = [2, 0], sizes = [2, 192], strides = [1, 1]} : vector<16x192xf32> to vector<2x192xf32>
    %46 = arith.truncf %41 : vector<2x48xf32> to vector<2x48xbf16>
    %cst_20 = arith.constant dense<0.000000e+00> : vector<2x192xf32>
    %47 = tpu.matmul %46, %10, %cst_20 {dimension_numbers = #tpu.dot_dimension_numbers<[1], [0], [0], [1], [0, 0, 1, 1], [], []>} : vector<2x48xbf16>, vector<48x192xbf16>, vector<2x192xf32> -> vector<2x192xf32>
    %48 = arith.addf %45, %47 : vector<2x192xf32>
    %49 = vector.extract_strided_slice %48 {offsets = [0, 0], sizes = [2, 48], strides = [1, 1]} : vector<2x192xf32> to vector<2x48xf32>
    %50 = arith.negf %49 : vector<2x48xf32>
    %51 = math.exp %50 : vector<2x48xf32>
    %cst_21 = arith.constant 1.000000e+00 : f32
    %52 = vector.broadcast %cst_21 : f32 to vector<2x48xf32>
    %53 = arith.addf %52, %51 : vector<2x48xf32>
    %54 = arith.divf %52, %53 : vector<2x48xf32>
    %55 = vector.extract_strided_slice %48 {offsets = [0, 48], sizes = [2, 48], strides = [1, 1]} : vector<2x192xf32> to vector<2x48xf32>
    %56 = arith.negf %55 : vector<2x48xf32>
    %57 = math.exp %56 : vector<2x48xf32>
    %cst_22 = arith.constant 1.000000e+00 : f32
    %58 = vector.broadcast %cst_22 : f32 to vector<2x48xf32>
    %59 = arith.addf %58, %57 : vector<2x48xf32>
    %60 = arith.divf %58, %59 : vector<2x48xf32>
    %61 = vector.extract_strided_slice %48 {offsets = [0, 96], sizes = [2, 48], strides = [1, 1]} : vector<2x192xf32> to vector<2x48xf32>
    %62 = math.tanh %61 : vector<2x48xf32>
    %63 = vector.extract_strided_slice %48 {offsets = [0, 144], sizes = [2, 48], strides = [1, 1]} : vector<2x192xf32> to vector<2x48xf32>
    %64 = arith.negf %63 : vector<2x48xf32>
    %65 = math.exp %64 : vector<2x48xf32>
    %cst_23 = arith.constant 1.000000e+00 : f32
    %66 = vector.broadcast %cst_23 : f32 to vector<2x48xf32>
    %67 = arith.addf %66, %65 : vector<2x48xf32>
    %68 = arith.divf %66, %67 : vector<2x48xf32>
    %69 = arith.mulf %60, %39 : vector<2x48xf32>
    %70 = arith.mulf %54, %62 : vector<2x48xf32>
    %71 = arith.addf %69, %70 : vector<2x48xf32>
    %72 = math.tanh %71 : vector<2x48xf32>
    %73 = arith.mulf %68, %72 : vector<2x48xf32>
    %c0_24 = arith.constant 0 : index
    %c2 = arith.constant 2 : index
    %c0_25 = arith.constant 0 : index
    %74 = vector.load %arg5[%c0_24, %c2, %c0_25] : memref<1x16x48xf32, #tpu.memory_space<vmem>>, vector<1x2x48xf32>
    %75 = vector.shape_cast %74 : vector<1x2x48xf32> to vector<2x48xf32>
    %76 = vector.shape_cast %73 : vector<2x48xf32> to vector<1x2x48xf32>
    tpu.vector_store %arg5[%c0_24, %c2, %c0_25], %76 {strides = array<i32>} : memref<1x16x48xf32, #tpu.memory_space<vmem>>, vector<1x2x48xf32>,
    %77 = vector.extract_strided_slice %8 {offsets = [4, 0], sizes = [2, 192], strides = [1, 1]} : vector<16x192xf32> to vector<2x192xf32>
    %78 = arith.truncf %73 : vector<2x48xf32> to vector<2x48xbf16>
    %cst_26 = arith.constant dense<0.000000e+00> : vector<2x192xf32>
    %79 = tpu.matmul %78, %10, %cst_26 {dimension_numbers = #tpu.dot_dimension_numbers<[1], [0], [0], [1], [0, 0, 1, 1], [], []>} : vector<2x48xbf16>, vector<48x192xbf16>, vector<2x192xf32> -> vector<2x192xf32>
    %80 = arith.addf %77, %79 : vector<2x192xf32>
    %81 = vector.extract_strided_slice %80 {offsets = [0, 0], sizes = [2, 48], strides = [1, 1]} : vector<2x192xf32> to vector<2x48xf32>
    %82 = arith.negf %81 : vector<2x48xf32>
    %83 = math.exp %82 : vector<2x48xf32>
    %cst_27 = arith.constant 1.000000e+00 : f32
    %84 = vector.broadcast %cst_27 : f32 to vector<2x48xf32>
    %85 = arith.addf %84, %83 : vector<2x48xf32>
    %86 = arith.divf %84, %85 : vector<2x48xf32>
    %87 = vector.extract_strided_slice %80 {offsets = [0, 48], sizes = [2, 48], strides = [1, 1]} : vector<2x192xf32> to vector<2x48xf32>
    %88 = arith.negf %87 : vector<2x48xf32>
    %89 = math.exp %88 : vector<2x48xf32>
    %cst_28 = arith.constant 1.000000e+00 : f32
    %90 = vector.broadcast %cst_28 : f32 to vector<2x48xf32>
    %91 = arith.addf %90, %89 : vector<2x48xf32>
    %92 = arith.divf %90, %91 : vector<2x48xf32>
    %93 = vector.extract_strided_slice %80 {offsets = [0, 96], sizes = [2, 48], strides = [1, 1]} : vector<2x192xf32> to vector<2x48xf32>
    %94 = math.tanh %93 : vector<2x48xf32>
    %95 = vector.extract_strided_slice %80 {offsets = [0, 144], sizes = [2, 48], strides = [1, 1]} : vector<2x192xf32> to vector<2x48xf32>
    %96 = arith.negf %95 : vector<2x48xf32>
    %97 = math.exp %96 : vector<2x48xf32>
    %cst_29 = arith.constant 1.000000e+00 : f32
    %98 = vector.broadcast %cst_29 : f32 to vector<2x48xf32>
    %99 = arith.addf %98, %97 : vector<2x48xf32>
    %100 = arith.divf %98, %99 : vector<2x48xf32>
    %101 = arith.mulf %92, %71 : vector<2x48xf32>
    %102 = arith.mulf %86, %94 : vector<2x48xf32>
    %103 = arith.addf %101, %102 : vector<2x48xf32>
    %104 = math.tanh %103 : vector<2x48xf32>
    %105 = arith.mulf %100, %104 : vector<2x48xf32>
    %c0_30 = arith.constant 0 : index
    %c4 = arith.constant 4 : index
    %c0_31 = arith.constant 0 : index
    %106 = vector.load %arg5[%c0_30, %c4, %c0_31] : memref<1x16x48xf32, #tpu.memory_space<vmem>>, vector<1x2x48xf32>
    %107 = vector.shape_cast %106 : vector<1x2x48xf32> to vector<2x48xf32>
    %108 = vector.shape_cast %105 : vector<2x48xf32> to vector<1x2x48xf32>
    tpu.vector_store %arg5[%c0_30, %c4, %c0_31], %108 {strides = array<i32>} : memref<1x16x48xf32, #tpu.memory_space<vmem>>, vector<1x2x48xf32>,
    %109 = vector.extract_strided_slice %8 {offsets = [6, 0], sizes = [2, 192], strides = [1, 1]} : vector<16x192xf32> to vector<2x192xf32>
    %110 = arith.truncf %105 : vector<2x48xf32> to vector<2x48xbf16>
    %cst_32 = arith.constant dense<0.000000e+00> : vector<2x192xf32>
    %111 = tpu.matmul %110, %10, %cst_32 {dimension_numbers = #tpu.dot_dimension_numbers<[1], [0], [0], [1], [0, 0, 1, 1], [], []>} : vector<2x48xbf16>, vector<48x192xbf16>, vector<2x192xf32> -> vector<2x192xf32>
    %112 = arith.addf %109, %111 : vector<2x192xf32>
    %113 = vector.extract_strided_slice %112 {offsets = [0, 0], sizes = [2, 48], strides = [1, 1]} : vector<2x192xf32> to vector<2x48xf32>
    %114 = arith.negf %113 : vector<2x48xf32>
    %115 = math.exp %114 : vector<2x48xf32>
    %cst_33 = arith.constant 1.000000e+00 : f32
    %116 = vector.broadcast %cst_33 : f32 to vector<2x48xf32>
    %117 = arith.addf %116, %115 : vector<2x48xf32>
    %118 = arith.divf %116, %117 : vector<2x48xf32>
    %119 = vector.extract_strided_slice %112 {offsets = [0, 48], sizes = [2, 48], strides = [1, 1]} : vector<2x192xf32> to vector<2x48xf32>
    %120 = arith.negf %119 : vector<2x48xf32>
    %121 = math.exp %120 : vector<2x48xf32>
    %cst_34 = arith.constant 1.000000e+00 : f32
    %122 = vector.broadcast %cst_34 : f32 to vector<2x48xf32>
    %123 = arith.addf %122, %121 : vector<2x48xf32>
    %124 = arith.divf %122, %123 : vector<2x48xf32>
    %125 = vector.extract_strided_slice %112 {offsets = [0, 96], sizes = [2, 48], strides = [1, 1]} : vector<2x192xf32> to vector<2x48xf32>
    %126 = math.tanh %125 : vector<2x48xf32>
    %127 = vector.extract_strided_slice %112 {offsets = [0, 144], sizes = [2, 48], strides = [1, 1]} : vector<2x192xf32> to vector<2x48xf32>
    %128 = arith.negf %127 : vector<2x48xf32>
    %129 = math.exp %128 : vector<2x48xf32>
    %cst_35 = arith.constant 1.000000e+00 : f32
    %130 = vector.broadcast %cst_35 : f32 to vector<2x48xf32>
    %131 = arith.addf %130, %129 : vector<2x48xf32>
    %132 = arith.divf %130, %131 : vector<2x48xf32>
    %133 = arith.mulf %124, %103 : vector<2x48xf32>
    %134 = arith.mulf %118, %126 : vector<2x48xf32>
    %135 = arith.addf %133, %134 : vector<2x48xf32>
    %136 = math.tanh %135 : vector<2x48xf32>
    %137 = arith.mulf %132, %136 : vector<2x48xf32>
    %c0_36 = arith.constant 0 : index
    %c6 = arith.constant 6 : index
    %c0_37 = arith.constant 0 : index
    %138 = vector.load %arg5[%c0_36, %c6, %c0_37] : memref<1x16x48xf32, #tpu.memory_space<vmem>>, vector<1x2x48xf32>
    %139 = vector.shape_cast %138 : vector<1x2x48xf32> to vector<2x48xf32>
    %140 = vector.shape_cast %137 : vector<2x48xf32> to vector<1x2x48xf32>
    tpu.vector_store %arg5[%c0_36, %c6, %c0_37], %140 {strides = array<i32>} : memref<1x16x48xf32, #tpu.memory_space<vmem>>, vector<1x2x48xf32>,
    %141 = vector.extract_strided_slice %8 {offsets = [8, 0], sizes = [2, 192], strides = [1, 1]} : vector<16x192xf32> to vector<2x192xf32>
    %142 = arith.truncf %137 : vector<2x48xf32> to vector<2x48xbf16>
    %cst_38 = arith.constant dense<0.000000e+00> : vector<2x192xf32>
    %143 = tpu.matmul %142, %10, %cst_38 {dimension_numbers = #tpu.dot_dimension_numbers<[1], [0], [0], [1], [0, 0, 1, 1], [], []>} : vector<2x48xbf16>, vector<48x192xbf16>, vector<2x192xf32> -> vector<2x192xf32>
    %144 = arith.addf %141, %143 : vector<2x192xf32>
    %145 = vector.extract_strided_slice %144 {offsets = [0, 0], sizes = [2, 48], strides = [1, 1]} : vector<2x192xf32> to vector<2x48xf32>
    %146 = arith.negf %145 : vector<2x48xf32>
    %147 = math.exp %146 : vector<2x48xf32>
    %cst_39 = arith.constant 1.000000e+00 : f32
    %148 = vector.broadcast %cst_39 : f32 to vector<2x48xf32>
    %149 = arith.addf %148, %147 : vector<2x48xf32>
    %150 = arith.divf %148, %149 : vector<2x48xf32>
    %151 = vector.extract_strided_slice %144 {offsets = [0, 48], sizes = [2, 48], strides = [1, 1]} : vector<2x192xf32> to vector<2x48xf32>
    %152 = arith.negf %151 : vector<2x48xf32>
    %153 = math.exp %152 : vector<2x48xf32>
    %cst_40 = arith.constant 1.000000e+00 : f32
    %154 = vector.broadcast %cst_40 : f32 to vector<2x48xf32>
    %155 = arith.addf %154, %153 : vector<2x48xf32>
    %156 = arith.divf %154, %155 : vector<2x48xf32>
    %157 = vector.extract_strided_slice %144 {offsets = [0, 96], sizes = [2, 48], strides = [1, 1]} : vector<2x192xf32> to vector<2x48xf32>
    %158 = math.tanh %157 : vector<2x48xf32>
    %159 = vector.extract_strided_slice %144 {offsets = [0, 144], sizes = [2, 48], strides = [1, 1]} : vector<2x192xf32> to vector<2x48xf32>
    %160 = arith.negf %159 : vector<2x48xf32>
    %161 = math.exp %160 : vector<2x48xf32>
    %cst_41 = arith.constant 1.000000e+00 : f32
    %162 = vector.broadcast %cst_41 : f32 to vector<2x48xf32>
    %163 = arith.addf %162, %161 : vector<2x48xf32>
    %164 = arith.divf %162, %163 : vector<2x48xf32>
    %165 = arith.mulf %156, %135 : vector<2x48xf32>
    %166 = arith.mulf %150, %158 : vector<2x48xf32>
    %167 = arith.addf %165, %166 : vector<2x48xf32>
    %168 = math.tanh %167 : vector<2x48xf32>
    %169 = arith.mulf %164, %168 : vector<2x48xf32>
    %c0_42 = arith.constant 0 : index
    %c8 = arith.constant 8 : index
    %c0_43 = arith.constant 0 : index
    %170 = vector.load %arg5[%c0_42, %c8, %c0_43] : memref<1x16x48xf32, #tpu.memory_space<vmem>>, vector<1x2x48xf32>
    %171 = vector.shape_cast %170 : vector<1x2x48xf32> to vector<2x48xf32>
    %172 = vector.shape_cast %169 : vector<2x48xf32> to vector<1x2x48xf32>
    tpu.vector_store %arg5[%c0_42, %c8, %c0_43], %172 {strides = array<i32>} : memref<1x16x48xf32, #tpu.memory_space<vmem>>, vector<1x2x48xf32>,
    %173 = vector.extract_strided_slice %8 {offsets = [10, 0], sizes = [2, 192], strides = [1, 1]} : vector<16x192xf32> to vector<2x192xf32>
    %174 = arith.truncf %169 : vector<2x48xf32> to vector<2x48xbf16>
    %cst_44 = arith.constant dense<0.000000e+00> : vector<2x192xf32>
    %175 = tpu.matmul %174, %10, %cst_44 {dimension_numbers = #tpu.dot_dimension_numbers<[1], [0], [0], [1], [0, 0, 1, 1], [], []>} : vector<2x48xbf16>, vector<48x192xbf16>, vector<2x192xf32> -> vector<2x192xf32>
    %176 = arith.addf %173, %175 : vector<2x192xf32>
    %177 = vector.extract_strided_slice %176 {offsets = [0, 0], sizes = [2, 48], strides = [1, 1]} : vector<2x192xf32> to vector<2x48xf32>
    %178 = arith.negf %177 : vector<2x48xf32>
    %179 = math.exp %178 : vector<2x48xf32>
    %cst_45 = arith.constant 1.000000e+00 : f32
    %180 = vector.broadcast %cst_45 : f32 to vector<2x48xf32>
    %181 = arith.addf %180, %179 : vector<2x48xf32>
    %182 = arith.divf %180, %181 : vector<2x48xf32>
    %183 = vector.extract_strided_slice %176 {offsets = [0, 48], sizes = [2, 48], strides = [1, 1]} : vector<2x192xf32> to vector<2x48xf32>
    %184 = arith.negf %183 : vector<2x48xf32>
    %185 = math.exp %184 : vector<2x48xf32>
    %cst_46 = arith.constant 1.000000e+00 : f32
    %186 = vector.broadcast %cst_46 : f32 to vector<2x48xf32>
    %187 = arith.addf %186, %185 : vector<2x48xf32>
    %188 = arith.divf %186, %187 : vector<2x48xf32>
    %189 = vector.extract_strided_slice %176 {offsets = [0, 96], sizes = [2, 48], strides = [1, 1]} : vector<2x192xf32> to vector<2x48xf32>
    %190 = math.tanh %189 : vector<2x48xf32>
    %191 = vector.extract_strided_slice %176 {offsets = [0, 144], sizes = [2, 48], strides = [1, 1]} : vector<2x192xf32> to vector<2x48xf32>
    %192 = arith.negf %191 : vector<2x48xf32>
    %193 = math.exp %192 : vector<2x48xf32>
    %cst_47 = arith.constant 1.000000e+00 : f32
    %194 = vector.broadcast %cst_47 : f32 to vector<2x48xf32>
    %195 = arith.addf %194, %193 : vector<2x48xf32>
    %196 = arith.divf %194, %195 : vector<2x48xf32>
    %197 = arith.mulf %188, %167 : vector<2x48xf32>
    %198 = arith.mulf %182, %190 : vector<2x48xf32>
    %199 = arith.addf %197, %198 : vector<2x48xf32>
    %200 = math.tanh %199 : vector<2x48xf32>
    %201 = arith.mulf %196, %200 : vector<2x48xf32>
    %c0_48 = arith.constant 0 : index
    %c10 = arith.constant 10 : index
    %c0_49 = arith.constant 0 : index
    %202 = vector.load %arg5[%c0_48, %c10, %c0_49] : memref<1x16x48xf32, #tpu.memory_space<vmem>>, vector<1x2x48xf32>
    %203 = vector.shape_cast %202 : vector<1x2x48xf32> to vector<2x48xf32>
    %204 = vector.shape_cast %201 : vector<2x48xf32> to vector<1x2x48xf32>
    tpu.vector_store %arg5[%c0_48, %c10, %c0_49], %204 {strides = array<i32>} : memref<1x16x48xf32, #tpu.memory_space<vmem>>, vector<1x2x48xf32>,
    %205 = vector.extract_strided_slice %8 {offsets = [12, 0], sizes = [2, 192], strides = [1, 1]} : vector<16x192xf32> to vector<2x192xf32>
    %206 = arith.truncf %201 : vector<2x48xf32> to vector<2x48xbf16>
    %cst_50 = arith.constant dense<0.000000e+00> : vector<2x192xf32>
    %207 = tpu.matmul %206, %10, %cst_50 {dimension_numbers = #tpu.dot_dimension_numbers<[1], [0], [0], [1], [0, 0, 1, 1], [], []>} : vector<2x48xbf16>, vector<48x192xbf16>, vector<2x192xf32> -> vector<2x192xf32>
    %208 = arith.addf %205, %207 : vector<2x192xf32>
    %209 = vector.extract_strided_slice %208 {offsets = [0, 0], sizes = [2, 48], strides = [1, 1]} : vector<2x192xf32> to vector<2x48xf32>
    %210 = arith.negf %209 : vector<2x48xf32>
    %211 = math.exp %210 : vector<2x48xf32>
    %cst_51 = arith.constant 1.000000e+00 : f32
    %212 = vector.broadcast %cst_51 : f32 to vector<2x48xf32>
    %213 = arith.addf %212, %211 : vector<2x48xf32>
    %214 = arith.divf %212, %213 : vector<2x48xf32>
    %215 = vector.extract_strided_slice %208 {offsets = [0, 48], sizes = [2, 48], strides = [1, 1]} : vector<2x192xf32> to vector<2x48xf32>
    %216 = arith.negf %215 : vector<2x48xf32>
    %217 = math.exp %216 : vector<2x48xf32>
    %cst_52 = arith.constant 1.000000e+00 : f32
    %218 = vector.broadcast %cst_52 : f32 to vector<2x48xf32>
    %219 = arith.addf %218, %217 : vector<2x48xf32>
    %220 = arith.divf %218, %219 : vector<2x48xf32>
    %221 = vector.extract_strided_slice %208 {offsets = [0, 96], sizes = [2, 48], strides = [1, 1]} : vector<2x192xf32> to vector<2x48xf32>
    %222 = math.tanh %221 : vector<2x48xf32>
    %223 = vector.extract_strided_slice %208 {offsets = [0, 144], sizes = [2, 48], strides = [1, 1]} : vector<2x192xf32> to vector<2x48xf32>
    %224 = arith.negf %223 : vector<2x48xf32>
    %225 = math.exp %224 : vector<2x48xf32>
    %cst_53 = arith.constant 1.000000e+00 : f32
    %226 = vector.broadcast %cst_53 : f32 to vector<2x48xf32>
    %227 = arith.addf %226, %225 : vector<2x48xf32>
    %228 = arith.divf %226, %227 : vector<2x48xf32>
    %229 = arith.mulf %220, %199 : vector<2x48xf32>
    %230 = arith.mulf %214, %222 : vector<2x48xf32>
    %231 = arith.addf %229, %230 : vector<2x48xf32>
    %232 = math.tanh %231 : vector<2x48xf32>
    %233 = arith.mulf %228, %232 : vector<2x48xf32>
    %c0_54 = arith.constant 0 : index
    %c12 = arith.constant 12 : index
    %c0_55 = arith.constant 0 : index
    %234 = vector.load %arg5[%c0_54, %c12, %c0_55] : memref<1x16x48xf32, #tpu.memory_space<vmem>>, vector<1x2x48xf32>
    %235 = vector.shape_cast %234 : vector<1x2x48xf32> to vector<2x48xf32>
    %236 = vector.shape_cast %233 : vector<2x48xf32> to vector<1x2x48xf32>
    tpu.vector_store %arg5[%c0_54, %c12, %c0_55], %236 {strides = array<i32>} : memref<1x16x48xf32, #tpu.memory_space<vmem>>, vector<1x2x48xf32>,
    %237 = vector.extract_strided_slice %8 {offsets = [14, 0], sizes = [2, 192], strides = [1, 1]} : vector<16x192xf32> to vector<2x192xf32>
    %238 = arith.truncf %233 : vector<2x48xf32> to vector<2x48xbf16>
    %cst_56 = arith.constant dense<0.000000e+00> : vector<2x192xf32>
    %239 = tpu.matmul %238, %10, %cst_56 {dimension_numbers = #tpu.dot_dimension_numbers<[1], [0], [0], [1], [0, 0, 1, 1], [], []>} : vector<2x48xbf16>, vector<48x192xbf16>, vector<2x192xf32> -> vector<2x192xf32>
    %240 = arith.addf %237, %239 : vector<2x192xf32>
    %241 = vector.extract_strided_slice %240 {offsets = [0, 0], sizes = [2, 48], strides = [1, 1]} : vector<2x192xf32> to vector<2x48xf32>
    %242 = arith.negf %241 : vector<2x48xf32>
    %243 = math.exp %242 : vector<2x48xf32>
    %cst_57 = arith.constant 1.000000e+00 : f32
    %244 = vector.broadcast %cst_57 : f32 to vector<2x48xf32>
    %245 = arith.addf %244, %243 : vector<2x48xf32>
    %246 = arith.divf %244, %245 : vector<2x48xf32>
    %247 = vector.extract_strided_slice %240 {offsets = [0, 48], sizes = [2, 48], strides = [1, 1]} : vector<2x192xf32> to vector<2x48xf32>
    %248 = arith.negf %247 : vector<2x48xf32>
    %249 = math.exp %248 : vector<2x48xf32>
    %cst_58 = arith.constant 1.000000e+00 : f32
    %250 = vector.broadcast %cst_58 : f32 to vector<2x48xf32>
    %251 = arith.addf %250, %249 : vector<2x48xf32>
    %252 = arith.divf %250, %251 : vector<2x48xf32>
    %253 = vector.extract_strided_slice %240 {offsets = [0, 96], sizes = [2, 48], strides = [1, 1]} : vector<2x192xf32> to vector<2x48xf32>
    %254 = math.tanh %253 : vector<2x48xf32>
    %255 = vector.extract_strided_slice %240 {offsets = [0, 144], sizes = [2, 48], strides = [1, 1]} : vector<2x192xf32> to vector<2x48xf32>
    %256 = arith.negf %255 : vector<2x48xf32>
    %257 = math.exp %256 : vector<2x48xf32>
    %cst_59 = arith.constant 1.000000e+00 : f32
    %258 = vector.broadcast %cst_59 : f32 to vector<2x48xf32>
    %259 = arith.addf %258, %257 : vector<2x48xf32>
    %260 = arith.divf %258, %259 : vector<2x48xf32>
    %261 = arith.mulf %252, %231 : vector<2x48xf32>
    %262 = arith.mulf %246, %254 : vector<2x48xf32>
    %263 = arith.addf %261, %262 : vector<2x48xf32>
    %264 = math.tanh %263 : vector<2x48xf32>
    %265 = arith.mulf %260, %264 : vector<2x48xf32>
    %c0_60 = arith.constant 0 : index
    %c14 = arith.constant 14 : index
    %c0_61 = arith.constant 0 : index
    %266 = vector.load %arg5[%c0_60, %c14, %c0_61] : memref<1x16x48xf32, #tpu.memory_space<vmem>>, vector<1x2x48xf32>
    %267 = vector.shape_cast %266 : vector<1x2x48xf32> to vector<2x48xf32>
    %268 = vector.shape_cast %265 : vector<2x48xf32> to vector<1x2x48xf32>
    tpu.vector_store %arg5[%c0_60, %c14, %c0_61], %268 {strides = array<i32>} : memref<1x16x48xf32, #tpu.memory_space<vmem>>, vector<1x2x48xf32>,
    return
  }
  func.func @transform_0(%arg0: i32) -> (i32, i32, i32) {
    %c0_i32 = arith.constant 0 : i32
    %c0_i32_0 = arith.constant 0 : i32
    %c0_i32_1 = arith.constant 0 : i32
    return %arg0, %c0_i32, %c0_i32_0 : i32, i32, i32
  }
  func.func @transform_1(%arg0: i32) -> (i32, i32, i32) {
    %c0_i32 = arith.constant 0 : i32
    %c0_i32_0 = arith.constant 0 : i32
    %c0_i32_1 = arith.constant 0 : i32
    return %arg0, %c0_i32, %c0_i32_0 : i32, i32, i32
  }
  func.func @transform_2(%arg0: i32) -> (i32, i32, i32) {
    %c0_i32 = arith.constant 0 : i32
    %c0_i32_0 = arith.constant 0 : i32
    %c0_i32_1 = arith.constant 0 : i32
    return %arg0, %c0_i32, %c0_i32_0 : i32, i32, i32
  }
  func.func @transform_3(%arg0: i32) -> (i32, i32, i32) {
    %c0_i32 = arith.constant 0 : i32
    %c0_i32_0 = arith.constant 0 : i32
    %c0_i32_1 = arith.constant 0 : i32
    return %arg0, %c0_i32, %c0_i32_0 : i32, i32, i32
  }
  func.func @transform_4(%arg0: i32) -> (i32, i32, i32) {
    %c0_i32 = arith.constant 0 : i32
    %c0_i32_0 = arith.constant 0 : i32
    %c0_i32_1 = arith.constant 0 : i32
    return %arg0, %c0_i32, %c0_i32_0 : i32, i32, i32
  }
}

</mosaic_0001>

<bundles_post_ra>
// kernel: tpu_custom_call.1
= control target key start
LH: loop header
LB: loop body
LE: loop exit
PB: predicated region body
PF: predicated region fallthrough
CT: control target
= control target key end

     0   :  { %s2283_s0 = inlined_call_operand.hbm [shape: bf16[2,16,48], index: 0, kind: input, shape index: {}]   ;;  %s2284_s1 = inlined_call_operand.hbm [shape: bf16[2,48,192], index: 1, kind: input, shape index: {}]   ;;  %s2285_s2 = inlined_call_operand.hbm [shape: bf16[2,48,192], index: 2, kind: input, shape index: {}]   ;;  %s2286_s3 = inlined_call_operand.vmem [shape: f32[2,1,192], index: 3, kind: input, shape index: {}]   ;;  %s2287_s4 = inlined_call_operand.hbm [shape: f32[2,16,48], index: 4, kind: output, shape index: {}]  }
   0x1   :  { %2294 = sst [smem:[#allocation13_spill]] %s2283_s0 }
   0x2   :  { %2295 = sst [smem:[#allocation14_spill]] %s2284_s1 }
   0x3   :  { %9 = vsyncpa [#allocation3], 0 }
   0x4   :  { %11 = vsyncpa [#allocation3 + $0x1], 0 }
   0x5   :  { %12 = vsyncpa [#allocation6], 0 }
   0x6   :  { %14 = vsyncpa [#allocation6 + $0x1], 0 }
   0x7   :  { %15 = vsyncpa [#allocation4], 0 }
   0x8   :  { %17 = vsyncpa [#allocation4 + $0x1], 0  ;;  %s1827_s15 = smov 0   ;;  %s1829_s16 = smov 0  }
   0x9   :  { %s1831_s17 = smov 0   ;;  %s1833_s18 = smov 0  }
   0xa LB: > { %s1848_s19 = sadd.s32 4294967295, %s1785_s18   ;;  %s1374_s20 = sadd.s32 4294967294, %s1785_s18   ;;  %s1785_s18 = sphi %s1833_s18, %s2319_s18   ;;  %s1781_s17 = sphi %s1831_s17, %s2318_s17   ;;  %s1777_s16 = sphi %s1829_s16, %s2317_s16   ;;  %s1773_s15 = sphi %s1827_s15, %s2316_s15  }
   0xb   : > { %s1852_s21 = sadd.s32 1, %s1785_s18   ;;  %s30_s22 = sadd.s32 1, %s1781_s17 }
   0xc   : > { %s27_s23 = ssub.s32 %s1785_s18, %s1852_s21  ;;  %p37_p0 = scmp.ne.s32.totalorder %s1781_s17, %s1777_s16 }
   0xd   : > { %p28_p1 = scmp.eq.s32.totalorder %s27_s23, 0  ;;  %p38_p2 = scmp.eq.s32.totalorder %s1785_s18, 0 }
   0xe   : > { %p43_p3 = scmp.ne.s32.totalorder %s1777_s16, %s1773_s15  ;;  %p44_p4 = scmp.eq.s32.totalorder %s1848_s19, 0 }
   0xf   : > { %s1864_s24 = scalar_select %p28_p1, %s1781_s17, %s30_s22  }
  0x10   : > { %p39_p5 = por %p38_p2, %p37_p0  ;;  %p1866_p6 = por %p44_p4, %p43_p3 }
  0x11   : > { %2296 = sst [smem:[#allocation12_spill]] %s1864_s24  ;;  %p145_p7 = scmp.eq.s32.totalorder %s1848_s19, 1 }
  0x12   : > { %s2297_s25 = scalar_select %p1866_p6, 1, 0 }
  0x13   : > { %p151_p8 = scmp.eq.s32.totalorder %s1374_s20, 1  ;;  %p1457_p10 = scmp.lt.s32.totalorder %s1785_s18, 2 }
  0x14   : > { %p1873_p11 = por %p145_p7, %p37_p0  ;;  %s1882_s28 = sand.u32 1, %s1781_s17  }
  0x15   : > { %p1877_p12 = por %p151_p8, %p43_p3  ;;  %p1884_p13 = pnand %p1457_p10, %p39_p5 }
  0x16   : > { %s2298_s26 = scalar_select %p1873_p11, 1, 0 }
  0x17   : > { %s2299_s27 = scalar_select %p1877_p12, 1, 0 }
  0x18   : > { %s192_s30 = sand.u32 1, %s1785_s18   ;;  %s2290_s5 = smul.u32 48, %s1882_s28 }
  0x19   : > { %s2291_s6 = smul.u32 768, %s1785_s18  ;;  %s2301_s1 = sld [smem:[#allocation14_spill]] }
  0x1a   : > { %s196_s7 = scalar_lea.vmem [#allocation5], %s2290_s5  ;;  %s1903_s12 = scalar_lea.sflag [#allocation6], %s192_s30 }
  0x1b   : > { %s203_s8 = sshll.u32 %s196_s7, 4  ;;  %p1909_p2 = pneg %p1884_p13  ;;  %s1900_s8 = int_to_ptr.vmem [resolvable:$true] %s203_s8 }
  0x1f   : > { %s1898_s11 = scalar_lea.hbm %s2301_s1, %s2291_s6  ;;  %s1638_s23 = scalar_lea.hbm %s2301_s1, 1536 }
  0x20   : > { %s1633_s13 = scalar_lea.hbm %s1898_s11, 768  ;;  %p1639_p5 = scmp.lt.s32.totalorder %s1898_s11, %s2301_s1 }
  0x21   : > { %p1634_p1 = scmp.ne.s32.totalorder %s1898_s11, %s1633_s13  ;;  %p1640_p7 = scmp.lt.s32.totalorder %s1638_s23, %s1633_s13 }
  0x23   : > { %p1636_p3 = pnand %p1909_p2, %p1634_p1  ;;  %p1641_p8 = por %p1640_p7, %p1639_p5 }
  0x25   : > { %p1637_p4 = pneg %p1636_p3 }
  0x27   : > { %p1642_p10 = pnand %p1641_p8, %p1637_p4 }
  0x29   : > { %1645 = shalt.err (!%p1642_p10)
}
  0x2a   : > { %s1646_s30 = scalar_lea.vmem %s1900_s8, 768  ;;  %s1787_s10 = smov [#allocation5]  }
  0x2b   : > { %p1647_p9 = scmp.ne.s32.totalorder %s1900_s8, %s1646_s30  ;;  %s1651_s20 = sshll.u32 %s1787_s10, 4  ;;  %s1652_s20 = int_to_ptr.vmem [resolvable:$false] %s1651_s20 }
  0x2c   : > { %s1653_s22 = scalar_lea.vmem %s1652_s20, 1536  ;;  %p1654_p0 = scmp.lt.s32.totalorder %s1900_s8, %s1652_s20 }
  0x2d   : > { %p1649_p1 = pnand %p1647_p9, %p1909_p2  ;;  %p1655_p12 = scmp.lt.s32.totalorder %s1653_s22, %s1646_s30 }
  0x2f   : > { %p1650_p3 = pneg %p1649_p1  ;;  %p1656_p11 = por %p1655_p12, %p1654_p0 }
  0x31   : > { %p1657_p6 = pnand %p1656_p11, %p1650_p3 }
  0x33   : > { %1660 = shalt.err (!%p1657_p6)
}
  0x34   : > { %s2292_s13 = smov 128   ;;  %s2293_s23 = smov 8  }
  0x35   : > { %1449 = dma.hbm_to_vmem [thread:$0]  (!%p1884_p13), %s1898_s11, 768, %s1900_s8, %s1903_s12, %s2292_s13, %s2292_s13, %s2293_s23  }
  0x36   : > { %p239_p9 = scmp.lt.s32.totalorder %s1785_s18, 3  ;;  %s1377_s7 = sshll.u32 %s1882_s28, 3 }
  0x37   : > { %s1428_s9 = sshll.u32 %s1785_s18, 7  ;;  %p2303_p6 = scmp.ge.s32.totalorder %s1785_s18, 1 }
  0x38   : > { %s2305_s0 = sld [smem:[#allocation13_spill]]  ;;  %s175_s5 = scalar_lea.vmem [#allocation2], %s1377_s7 }
  0x39   : > { %p1940_p11 = pnand %p2303_p6, %p239_p9  ;;  %s182_s6 = sshll.u32 %s175_s5, 4  ;;  %s1949_s6 = int_to_ptr.vmem [resolvable:$true] %s182_s6 }
  0x3a   : > { %s172_s8 = scalar_lea.sflag [#allocation3], %s1882_s28 }
  0x3b   : > { %s2304_s30 = scalar_select %p1940_p11, 1, 0 }
  0x3e   : > { %s1947_s22 = scalar_lea.hbm %s2305_s0, %s1428_s9  ;;  %s1666_s1 = scalar_lea.hbm %s2305_s0, 256 }
  0x3f   : > { %s1661_s11 = scalar_lea.hbm %s1947_s22, 128  ;;  %p1667_p5 = scmp.lt.s32.totalorder %s1947_s22, %s2305_s0 }
  0x40   : > { %p1662_p12 = scmp.ne.s32.totalorder %s1947_s22, %s1661_s11  ;;  %p1668_p7 = scmp.lt.s32.totalorder %s1666_s1, %s1661_s11 }
  0x42   : > { %p1664_p0 = pnand %p1662_p12, %p1909_p2  ;;  %p1669_p8 = por %p1668_p7, %p1667_p5 }
  0x44   : > { %p1665_p4 = pneg %p1664_p0 }
  0x46   : > { %p1670_p10 = pnand %p1669_p8, %p1665_p4 }
  0x48   : > { %1673 = shalt.err (!%p1670_p10)
}
  0x49   : > { %s1674_s5 = scalar_lea.vmem %s1949_s6, 128  ;;  %s1790_s7 = smov [#allocation2]  }
  0x4a   : > { %p1675_p1 = scmp.ne.s32.totalorder %s1949_s6, %s1674_s5  ;;  %s1679_s13 = sshll.u32 %s1790_s7, 4  ;;  %s1680_s13 = int_to_ptr.vmem [resolvable:$false] %s1679_s13 }
  0x4b   : > { %s1681_s23 = scalar_lea.vmem %s1680_s13, 256  ;;  %p1682_p6 = scmp.lt.s32.totalorder %s1949_s6, %s1680_s13 }
  0x4c   : > { %p1677_p3 = pnand %p1675_p1, %p1909_p2  ;;  %p1683_p12 = scmp.lt.s32.totalorder %s1681_s23, %s1674_s5 }
  0x4e   : > { %p1678_p9 = pneg %p1677_p3  ;;  %p1684_p0 = por %p1683_p12, %p1682_p6 }
  0x50   : > { %p1685_p11 = pnand %p1684_p0, %p1678_p9 }
  0x52   : > { %1688 = shalt.err (!%p1685_p11)
}
  0x53   : > { %s1791_s1 = smov 64   ;;  %s1792_s20 = smov 4  }
  0x54   : > { %1446 = dma.hbm_to_vmem [thread:$0]  (!%p1884_p13), %s1947_s22, 128, %s1949_s6, %s172_s8, %s1791_s1, %s1791_s1, %s1792_s20  }
  0x55   : > { %s2306_s11 = smul.u32 768, %s1785_s18  ;;  %s1694_s22 = scalar_lea.hbm %s2285_s2, 1536 }
  0x56   : > { %s2307_s7 = smul.u32 48, %s1882_s28 }
  0x57   : > { %s1979_s5 = scalar_lea.hbm %s2285_s2, %s2306_s11 }
  0x58   : > { %s217_s13 = scalar_lea.vmem [#allocation7], %s2307_s7  ;;  %s1689_s0 = scalar_lea.hbm %s1979_s5, 768 }
  0x59   : > { %s224_s23 = sshll.u32 %s217_s13, 4  ;;  %p1690_p11 = scmp.ne.s32.totalorder %s1979_s5, %s1689_s0  ;;  %s225_s23 = int_to_ptr.vmem [resolvable:$true] %s224_s23 }
  0x5a   : > { %p1695_p7 = scmp.lt.s32.totalorder %s1979_s5, %s2285_s2  ;;  %p1696_p8 = scmp.lt.s32.totalorder %s1694_s22, %s1689_s0 }
  0x5b   : > { %p1692_p4 = pnand %p1690_p11, %p1909_p2 }
  0x5c   : > { %p1697_p10 = por %p1696_p8, %p1695_p7 }
  0x5d   : > { %p1693_p5 = pneg %p1692_p4 }
  0x5f   : > { %p1698_p1 = pnand %p1697_p10, %p1693_p5 }
  0x61   : > { %1701 = shalt.err (!%p1698_p1)
}
  0x62   : > { %s1702_s28 = scalar_lea.vmem %s225_s23, 768  ;;  %s1793_s20 = smov [#allocation7]  }
  0x63   : > { %p1703_p3 = scmp.ne.s32.totalorder %s225_s23, %s1702_s28  ;;  %s1707_s11 = sshll.u32 %s1793_s20, 4  ;;  %s1708_s11 = int_to_ptr.vmem [resolvable:$false] %s1707_s11 }
  0x64   : > { %s1709_s10 = scalar_lea.vmem %s1708_s11, 1536  ;;  %p1710_p12 = scmp.lt.s32.totalorder %s225_s23, %s1708_s11 }
  0x65   : > { %p1705_p9 = pnand %p1703_p3, %p1909_p2  ;;  %p1711_p0 = scmp.lt.s32.totalorder %s1709_s10, %s1702_s28 }
  0x67   : > { %p1706_p6 = pneg %p1705_p9  ;;  %p1712_p11 = por %p1711_p0, %p1710_p12 }
  0x69   : > { %p1713_p4 = pnand %p1712_p11, %p1706_p6 }
  0x6b   : > { %1716 = shalt.err (!%p1713_p4)
}
  0x6c   : > { %s2308_s0 = smov 8   ;;  %s2309_s24 = smov 128  }
  0x6d   : > { %1452 = dma.hbm_to_vmem [thread:$0]  (!%p1884_p13), %s1979_s5, 768, %s225_s23, %s1903_s12, %s2309_s24, %s2309_s24, %s2308_s0  }
  0x6e   : > { %p2310_p2 = scmp.ne.s32.totalorder %s2304_s30, 0 }
  0x6f   : > { %s2006_s14 = sand.u32 (!%p2310_p2), 1, %s1777_s16   ;;  %p2311_p5 = scmp.ne.s32.totalorder (!%p2310_p2), %s2297_s25, 0 }
  0x70   : > { %243 = sbr.rel (%p2310_p2) target bundleno = 5726 (0x165e), region = 36  ;;  %s1383_s9 = sshll.u32 (!%p2310_p2), %s2006_s14, 3 }
  0x71   : > { %s246_s7 = scalar_lea.sflag (!%p2310_p2), [#allocation3], %s2006_s14  ;;  %s2010_s13 = scalar_lea.vmem (!%p2310_p2), [#allocation2], %s1383_s9 }
  0x75   : > { %1760 = dma.done.wait (%p2311_p5), %s246_s7, 128  }
  0x76   : > { %1762 = vsyncadd (%p2311_p5), %s246_s7, 4294967168  ;;  %s254_s29 = sand.u32 1, %s1848_s19   ;;  %s1434_s12 = smul.u32 48, %s2006_s14 }
  0x77   : > { %s255_s30 = scalar_lea.sflag [#allocation6], %s254_s29 }
  0x78   : > { %s258_s5 = scalar_lea.vmem [#allocation5], %s1434_s12 }
  0x79   : > { %1764 = dma.done.wait (%p2311_p5), %s255_s30, 1536  }
  0x7a   : > { %1766 = vsyncadd (%p2311_p5), %s255_s30, 4294965760  ;;  %v1794_v0 = vmov 0   ;;  %v1502_v1 = vld [vmem:[%s258_s5 + $0x24] ss:$8 sps:$4 sm:$0xff]   ;;  %s267_s23 = scalar_lea.vmem [#allocation7], %s1434_s12  ;;  %vm366_vm0 = vcmask 392192   ;;  %v321_v14 = vlaneseq }
  0x7b   : > { %402 = vmatprep.mubr.bf16.mxu0 %v1794_v0  ;;  %484 = vmatprep.mubr.bf16.mxu1 %v1794_v0  ;;  %v2024_v2 = vld [vmem:[%s267_s23 + $0x24] ss:$8 sps:$4 sm:$0xff]   ;;  %v1506_v3 = vld [vmem:[%s258_s5 + $0x20] ss:$8 sps:$4 sm:$0xff]   ;;  %v1508_v5 = vld [vmem:[%s258_s5 + $0x14] ss:$8 sps:$4 sm:$0xff]  }
  0x7c   : > { %380 = vmatprep.subr.bf16.mxu0 %v1502_v1  ;;  %v2026_v4 = vld [vmem:[%s267_s23 + $0x20] ss:$8 sps:$4 sm:$0xff]   ;;  %462 = vmatprep.subr.bf16.mxu1 %v2024_v2  ;;  %v2030_v6 = vld [vmem:[%s267_s23 + $0x14] ss:$8 sps:$4 sm:$0xff]   ;;  %v1512_v7 = vld [vmem:[%s258_s5 + $0x10] ss:$8 sps:$4 sm:$0xff]  }
  0x7d   : > { %381 = vmatpush1.bf16.msra.mxu0 %v1506_v3  ;;  %463 = vmatpush1.bf16.msra.mxu1 %v2026_v4  ;;  %v2032_v8 = vld [vmem:[%s267_s23 + $0x10] ss:$8 sps:$4 sm:$0xff]   ;;  %v1514_v9 = vld [vmem:[%s258_s5 + $0x4] ss:$8 sps:$4 sm:$0xff]   ;;  %v1518_v11 = vld [vmem:[%s258_s5] ss:$8 sps:$4 sm:$0xff]  }
  0x7e   : > { %382 = vmatprep.subr.bf16.mxu0 %v1508_v5  ;;  %464 = vmatprep.subr.bf16.mxu1 %v2030_v6  ;;  %v2035_v10 = vld [vmem:[%s267_s23 + $0x4] ss:$8 sps:$4 sm:$0xff]   ;;  %v2038_v12 = vld [vmem:[%s267_s23] ss:$8 sps:$4 sm:$0xff]   ;;  %p306_p13 = scmp.lt.s32.totalorder %s1848_s19, 1  ;;  %v322_v15 = vshrl.u32 %v321_v14, 7 }
  0x7f   : > { %v1520_v13 = vld [vmem:[%s2010_s13] sm:$0xff]   ;;  %s1795_s28 = smov 32   ;;  %vm516_vm1 = vcmask 261120   ;;  %s1796_s20 = smov 48   ;;  %vm535_vm2 = vcmask 386048   ;;  %vm736_vm3 = vcmask 390148  }
  0x80   : > { %s307_s25 = scalar_select %p306_p13, %s1848_s19, 1  ;;  %v323_v16 = vsub.s32 0, %v322_v15  ;;  %v327_v18 = vsub.s32 1, %v322_v15  ;;  %vm635_vm4 = vcmask 388098   ;;  %vm837_vm5 = vcmask 392198  }
  0x81   : > { %383 = vmatpush1.bf16.msra.mxu0 %v1512_v7  ;;  %465 = vmatpush1.bf16.msra.mxu1 %v2032_v8  ;;  %s1797_s11 = smov 96   ;;  %s1798_s10 = smov 112  }
  0x82   : > { %384 = vmatprep.subr.bf16.mxu0 %v1514_v9  ;;  %466 = vmatprep.subr.bf16.mxu1 %v2035_v10  ;;  %s1385_s6 = sshll.u32 %s307_s25, 1  ;;  %s1384_s0 = sshll.u32 %s2006_s14, 4 }
  0x83   : > { %s309_s1 = scalar_lea.vmem %s2286_s3, %s1385_s6  ;;  %s2215_s24 = scalar_lea.vmem [#allocation8], %s1384_s0 }
  0x84   : > { %v319_v17 = vld [vmem:[%s309_s1] sm:$0x3]  ;;  %s1246_s9 = sshll.u32 %s2215_s24, 4  ;;  %s1429_s7 = sshll.u32 %s1848_s19, 8  ;;  %s2234_s9 = int_to_ptr.vmem [resolvable:$true] %s1246_s9 }
  0x85   : > { %385 = vmatpush1.bf16.msra.mxu0 %v1518_v11  ;;  %467 = vmatpush1.bf16.msra.mxu1 %v2038_v12  ;;  %v324_v19 = vrot.slane %v319_v17, %v323_v16  ;;  %v2066_v20 = vrot.slane %v319_v17, %v327_v18  ;;  %s2239_s12 = scalar_lea.hbm %s2287_s4, %s1429_s7  ;;  %s1233_s30 = scalar_lea.sflag [#allocation4], %s2006_s14 }
  0x86   : > { %554 = vmatprep.subr.bf16.mxu0 %v2024_v2  ;;  %655 = vmatprep.subr.bf16.mxu1 %v2024_v2  ;;  %s1717_s5 = scalar_lea.vmem %s2234_s9, 256  ;;  %p2312_p8 = scmp.ne.s32.totalorder %s2298_s26, 0 }
  0x87   : > { %p1718_p7 = scmp.ne.s32.totalorder %s2234_s9, %s1717_s5  ;;  %s1799_s23 = smov [#allocation8]  }
  0x88   : > { %1393 = vmatmul.mubr.msk.bf16.vlgmr.msra.gmra.mxu0 %vm366_vm0, %v1520_v13  ;;  %485 = vmatmul.mubr.bf16.vlgmr.msra.gmra.mxu1 %v1794_v0  ;;  %s1721_s19 = sshll.u32 %s1799_s23, 4  ;;  %s1722_s19 = int_to_ptr.vmem [resolvable:$false] %s1721_s19 }
  0x89   : > { %555 = vmatpush1.bf16.msra.mxu0 %v2026_v4  ;;  %576 = vmatprep.mubr.bf16.mxu0 %v1794_v0  ;;  %p1719_p10 = pnand %p1718_p7, %p2312_p8  ;;  %s1723_s25 = scalar_lea.vmem %s1722_s19, 512 }
  0x8a   : > { %556 = vmatprep.subr.bf16.mxu0 %v2030_v6  ;;  %656 = vmatpush1.bf16.msra.mxu1 %v2026_v4  ;;  %p1724_p3 = scmp.lt.s32.totalorder %s2234_s9, %s1722_s19  ;;  %p1725_p9 = scmp.lt.s32.totalorder %s1723_s25, %s1717_s5 }
  0x8b   : > { %657 = vmatprep.subr.bf16.mxu1 %v2030_v6  ;;  %677 = vmatprep.mubr.bf16.mxu1 %v1794_v0  ;;  %p1720_p1 = pneg %p1719_p10 }
  0x8c   : > { %p1726_p6 = por %p1725_p9, %p1724_p3 }
  0x8d   : > { %557 = vmatpush1.bf16.msra.mxu0 %v2032_v8 }
  0x8e   : > { %558 = vmatprep.subr.bf16.mxu0 %v2035_v10  ;;  %658 = vmatpush1.bf16.msra.mxu1 %v2032_v8  ;;  %p1727_p12 = pnand %p1726_p6, %p1720_p1 }
  0x8f   : > { %659 = vmatprep.subr.bf16.mxu1 %v2035_v10 }
  0x91   : > { %559 = vmatpush1.bf16.msra.mxu0 %v2038_v12 }
  0x92   : > { %660 = vmatpush1.bf16.msra.mxu1 %v2038_v12  ;;  %756 = vmatprep.subr.bf16.mxu0 %v2024_v2 }
  0x93   : > { %857 = vmatprep.subr.bf16.mxu1 %v2024_v2 }
 0x148   : > { %v404_v21 = vpop.f32.mrf.mxu0  ;;  %v486_v22 = vpop.f32.mrf.mxu1 }
 0x149   : > { %v2068_v23 = vadd.f32 %v404_v21, %v324_v19 }
 0x14a   : > { %v406_v24 = vpop.f32.mrf.mxu0  ;;  %v488_v25 = vpop.f32.mrf.mxu1 }
 0x14b   : > { %v493_v26 = vadd.f32 %v486_v22, %v2068_v23  ;;  %v2072_v27 = vadd.f32 %v406_v24, %v2066_v20 }
 0x14c   : > { %v408_v28 = vpop.f32.mrf.mxu0  ;;  %v490_v29 = vpop.f32.mrf.mxu1 }
 0x14d   : > { %1521 = vtanh.f32 %v493_v26  ;;  %v494_v30 = vadd.f32 %v488_v25, %v2072_v27  ;;  %v2075_v31 = vadd.f32 %v408_v28, %v324_v19  ;;  %v1400_v35 = vmul.f32 -1.442695, %v493_v26 }
 0x14e   : > { %v491_v32 = vpop.f32.mrf.mxu1  ;;  %v2095_v55 = vpop.f32.mrf.mxu0 }
 0x14f   : > { %1523 = vtanh.f32 %v494_v30  ;;  %v1401_v47 = vmul.f32 -1.442695, %v494_v30 }
 0x150   : > { %1525 = vpow2.f32 %v1400_v35 }
 0x15a   : > { %v1522_v33 = vpop.eup %1521 }
 0x15b   : > { %512 = vrot.lane.b32.xlu0 %v1522_v33, %s1795_s28 }
 0x15c   : > { %v1524_v34 = vpop.eup %1523 }
 0x15d   : > { %v1526_v36 = vpop.eup %1525 }
 0x15e   : > { %v498_v37 = vadd.f32 1.0, %v1526_v36 }
 0x15f   : > { %514 = vrot.lane.b32.xlu0 %v1524_v34, %s1795_s28 }
 0x160   : > { %1527 = vrcp.f32 %v498_v37 }
 0x16d   : > { %v1528_v40 = vpop.eup %1527 }
 0x16e   : > { %v509_v43 = vmul.f32 0.0, %v1528_v40 }
 0x1cd   : > { %v513_v38 = vpop.permute.xlu0 %512 }
 0x1d1   : > { %v515_v39 = vpop.permute.xlu0 %514 }
 0x1d2   : > { %v517_v41 = vsel %vm516_vm1, %v513_v38, %v515_v39 }
 0x1d3   : > { %v519_v42 = vmul.f32 %v1528_v40, %v517_v41 }
 0x1d5   : > { %521 = vrot.lane.b32.xlu1 %v519_v42, %s1796_s20 }
 0x247   : > { %v522_v44 = vpop.permute.xlu1 %521 }
 0x248   : > { %v524_v45 = vadd.f32 %v522_v44, %v509_v43 }
 0x24a   : > { %1529 = vtanh.f32 %v524_v45  ;;  %v608_v17 = vrot.slane %v524_v45, 6 }
 0x24b   : > { %1531 = vpow2.f32 %v1401_v47 }
 0x257   : > { %v1530_v46 = vpop.eup %1529 }
 0x258   : > { %527 = vrot.lane.b32.xlu1 %v1530_v46, %s1797_s11  ;;  %v1532_v48 = vpop.eup %1531 }
 0x259   : > { %v506_v49 = vadd.f32 1.0, %v1532_v48 }
 0x25b   : > { %1533 = vrcp.f32 %v506_v49 }
 0x268   : > { %v1534_v50 = vpop.eup %1533 }
 0x2ca   : > { %v528_v51 = vpop.permute.xlu1 %527 }
 0x2cb   : > { %v2082_v52 = vmul.f32 %v1534_v50, %v528_v51 }
 0x2cd   : > { %v537_v53 = vpack.c.bf16 %v2082_v52, %v2082_v52 }
 0x2cf   : > { %539 = vrot.lane.b32.xlu0 %v537_v53, %s1798_s10 }
 0x341   : > { %v540_v54 = vpop.permute.xlu0 %539 }
 0x342   : > { %1402 = vmatmul.mubr.msk.bf16.vlgmr.msra.gmra.mxu0 %vm366_vm0, %v540_v54 }
 0x343   : > { %757 = vmatpush1.bf16.msra.mxu0 %v2026_v4  ;;  %778 = vmatprep.mubr.bf16.mxu0 %v1794_v0 }
 0x344   : > { %758 = vmatprep.subr.bf16.mxu0 %v2030_v6 }
 0x347   : > { %759 = vmatpush1.bf16.msra.mxu0 %v2032_v8 }
 0x348   : > { %760 = vmatprep.subr.bf16.mxu0 %v2035_v10 }
 0x34b   : > { %761 = vmatpush1.bf16.msra.mxu0 %v2038_v12 }
 0x34c   : > { %950 = vmatprep.subr.bf16.mxu0 %v2024_v2 }
 0x402   : > { %v578_v56 = vpop.f32.mrf.mxu0 }
 0x403   : > { %v587_v57 = vrot.slane %v578_v56, 6 }
 0x404   : > { %v580_v58 = vpop.f32.mrf.mxu0 }
 0x405   : > { %v591_v59 = vadd.f32 %v587_v57, %v2068_v23  ;;  %v588_v60 = vrot.slane %v580_v58, 6 }
 0x406   : > { %v582_v61 = vpop.f32.mrf.mxu0 }
 0x407   : > { %1535 = vtanh.f32 %v591_v59  ;;  %v592_v62 = vadd.f32 %v588_v60, %v2072_v27  ;;  %v1403_v5 = vmul.f32 -1.442695, %v591_v59 }
 0x408   : > { %v583_v63 = vpop.f32.mrf.mxu0 }
 0x409   : > { %1537 = vtanh.f32 %v592_v62  ;;  %v1404_v24 = vmul.f32 -1.442695, %v592_v62 }
 0x40a   : > { %1539 = vpow2.f32 %v1403_v5 }
 0x414   : > { %v1536_v1 = vpop.eup %1535 }
 0x415   : > { %613 = vrot.lane.b32.xlu1 %v1536_v1, %s1795_s28 }
 0x416   : > { %v1538_v3 = vpop.eup %1537 }
 0x417   : > { %615 = vrot.lane.b32.xlu0 %v1538_v3, %s1795_s28  ;;  %v1540_v7 = vpop.eup %1539 }
 0x418   : > { %v596_v9 = vadd.f32 1.0, %v1540_v7 }
 0x41a   : > { %1541 = vrcp.f32 %v596_v9 }
 0x427   : > { %v1542_v14 = vpop.eup %1541 }
 0x428   : > { %v610_v18 = vmul.f32 %v1542_v14, %v608_v17 }
 0x487   : > { %v614_v11 = vpop.permute.xlu1 %613 }
 0x489   : > { %v616_v13 = vpop.permute.xlu0 %615 }
 0x48a   : > { %v617_v15 = vsel %vm516_vm1, %v614_v11, %v616_v13 }
 0x48b   : > { %v619_v16 = vmul.f32 %v1542_v14, %v617_v15 }
 0x48d   : > { %621 = vrot.lane.b32.xlu1 %v619_v16, %s1796_s20 }
 0x4ff   : > { %v622_v19 = vpop.permute.xlu1 %621 }
 0x500   : > { %v624_v21 = vadd.f32 %v622_v19, %v610_v18 }
 0x502   : > { %1543 = vtanh.f32 %v624_v21  ;;  %v709_v54 = vrot.slane %v624_v21, 6 }
 0x503   : > { %1545 = vpow2.f32 %v1404_v24 }
 0x50f   : > { %v1544_v22 = vpop.eup %1543 }
 0x510   : > { %627 = vrot.lane.b32.xlu0 %v1544_v22, %s1797_s11  ;;  %v1546_v25 = vpop.eup %1545 }
 0x511   : > { %v604_v26 = vadd.f32 1.0, %v1546_v25 }
 0x513   : > { %1547 = vrcp.f32 %v604_v26 }
 0x520   : > { %v1548_v28 = vpop.eup %1547 }
 0x582   : > { %v628_v29 = vpop.permute.xlu0 %627 }
 0x583   : > { %v2104_v30 = vmul.f32 %v1548_v28, %v628_v29 }
 0x585   : > { %v637_v32 = vpack.c.bf16 %v2104_v30, %v2104_v30 }
 0x587   : > { %v639_v33 = vrot.slane %v637_v32, 1 }
 0x589   : > { %640 = vrot.lane.b32.xlu1 %v639_v33, %s1798_s10 }
 0x5fb   : > { %v641_v34 = vpop.permute.xlu1 %640 }
 0x5fc   : > { %1405 = vmatmul.mubr.msk.bf16.vlgmr.msra.gmra.mxu1 %vm366_vm0, %v641_v34 }
 0x5fd   : > { %858 = vmatpush1.bf16.msra.mxu1 %v2026_v4  ;;  %879 = vmatprep.mubr.bf16.mxu1 %v1794_v0 }
 0x5fe   : > { %859 = vmatprep.subr.bf16.mxu1 %v2030_v6 }
 0x601   : > { %860 = vmatpush1.bf16.msra.mxu1 %v2032_v8 }
 0x602   : > { %861 = vmatprep.subr.bf16.mxu1 %v2035_v10 }
 0x605   : > { %862 = vmatpush1.bf16.msra.mxu1 %v2038_v12 }
 0x606   : > { %1050 = vmatprep.subr.bf16.mxu1 %v2024_v2 }
 0x6bc   : > { %v679_v35 = vpop.f32.mrf.mxu1 }
 0x6bd   : > { %v688_v36 = vrot.slane %v679_v35, 4 }
 0x6be   : > { %v681_v37 = vpop.f32.mrf.mxu1 }
 0x6bf   : > { %v692_v38 = vadd.f32 %v688_v36, %v2068_v23  ;;  %v689_v39 = vrot.slane %v681_v37, 4 }
 0x6c0   : > { %v683_v40 = vpop.f32.mrf.mxu1 }
 0x6c1   : > { %1549 = vtanh.f32 %v692_v38  ;;  %v693_v41 = vadd.f32 %v689_v39, %v2072_v27  ;;  %v1406_v45 = vmul.f32 -1.442695, %v692_v38 }
 0x6c2   : > { %v684_v42 = vpop.f32.mrf.mxu1 }
 0x6c3   : > { %1551 = vtanh.f32 %v693_v41  ;;  %v1407_v60 = vmul.f32 -1.442695, %v693_v41 }
 0x6c4   : > { %1553 = vpow2.f32 %v1406_v45 }
 0x6ce   : > { %v1550_v43 = vpop.eup %1549 }
 0x6cf   : > { %714 = vrot.lane.b32.xlu0 %v1550_v43, %s1795_s28 }
 0x6d0   : > { %v1552_v44 = vpop.eup %1551 }
 0x6d1   : > { %716 = vrot.lane.b32.xlu1 %v1552_v44, %s1795_s28  ;;  %v1554_v46 = vpop.eup %1553 }
 0x6d2   : > { %v697_v47 = vadd.f32 1.0, %v1554_v46 }
 0x6d4   : > { %1555 = vrcp.f32 %v697_v47  ;;  %v2158_v47 = vadd.f32 %v2095_v55, %v2066_v20 }
 0x6e1   : > { %v1556_v50 = vpop.eup %1555 }
 0x6e2   : > { %v711_v56 = vmul.f32 %v1556_v50, %v709_v54 }
 0x741   : > { %v715_v48 = vpop.permute.xlu0 %714 }
 0x743   : > { %v717_v49 = vpop.permute.xlu1 %716 }
 0x744   : > { %v718_v51 = vsel %vm516_vm1, %v715_v48, %v717_v49 }
 0x745   : > { %v720_v53 = vmul.f32 %v1556_v50, %v718_v51 }
 0x747   : > { %722 = vrot.lane.b32.xlu0 %v720_v53, %s1796_s20 }
 0x7b9   : > { %v723_v57 = vpop.permute.xlu0 %722 }
 0x7ba   : > { %v725_v58 = vadd.f32 %v723_v57, %v711_v56 }
 0x7bc   : > { %1557 = vtanh.f32 %v725_v58 }
 0x7bd   : > { %1559 = vpow2.f32 %v1407_v60 }
 0x7c9   : > { %v1558_v59 = vpop.eup %1557 }
 0x7ca   : > { %728 = vrot.lane.b32.xlu1 %v1558_v59, %s1797_s11  ;;  %v1560_v61 = vpop.eup %1559 }
 0x7cb   : > { %v705_v62 = vadd.f32 1.0, %v1560_v61 }
 0x7cd   : > { %1561 = vrcp.f32 %v705_v62 }
 0x7da   : > { %v1562_v63 = vpop.eup %1561 }
 0x83c   : > { %v729_v1 = vpop.permute.xlu1 %728 }
 0x83d   : > { %v2124_v3 = vmul.f32 %v1562_v63, %v729_v1 }
 0x83f   : > { %v738_v5 = vpack.c.bf16 %v2124_v3, %v2124_v3 }
 0x841   : > { %v740_v7 = vrot.slane %v738_v5, 2 }
 0x843   : > { %741 = vrot.lane.b32.xlu0 %v740_v7, %s1798_s10 }
 0x8b5   : > { %v742_v9 = vpop.permute.xlu0 %741 }
 0x8b6   : > { %1408 = vmatmul.mubr.msk.bf16.vlgmr.msra.gmra.mxu0 %vm366_vm0, %v742_v9 }
 0x8b7   : > { %951 = vmatpush1.bf16.msra.mxu0 %v2026_v4  ;;  %972 = vmatprep.mubr.bf16.mxu0 %v1794_v0 }
 0x8b8   : > { %952 = vmatprep.subr.bf16.mxu0 %v2030_v6 }
 0x8bb   : > { %953 = vmatpush1.bf16.msra.mxu0 %v2032_v8 }
 0x8bc   : > { %954 = vmatprep.subr.bf16.mxu0 %v2035_v10 }
 0x8bf   : > { %955 = vmatpush1.bf16.msra.mxu0 %v2038_v12 }
 0x8c0   : > { %1150 = vmatprep.subr.bf16.mxu0 %v2024_v2 }
 0x976   : > { %v780_v11 = vpop.f32.mrf.mxu0 }
 0x977   : > { %v789_v13 = vrot.slane %v780_v11, 2 }
 0x978   : > { %v782_v14 = vpop.f32.mrf.mxu0 }
 0x979   : > { %v793_v15 = vadd.f32 %v789_v13, %v2068_v23  ;;  %v790_v16 = vrot.slane %v782_v14, 2 }
 0x97a   : > { %v784_v17 = vpop.f32.mrf.mxu0 }
 0x97b   : > { %1563 = vtanh.f32 %v793_v15  ;;  %v794_v18 = vadd.f32 %v790_v16, %v2072_v27  ;;  %v1409_v24 = vmul.f32 -1.442695, %v793_v15  ;;  %v810_v27 = vrot.slane %v725_v58, 6 }
 0x97c   : > { %v785_v19 = vpop.f32.mrf.mxu0 }
 0x97d   : > { %1565 = vtanh.f32 %v794_v18  ;;  %v1410_v37 = vmul.f32 -1.442695, %v794_v18 }
 0x97e   : > { %1567 = vpow2.f32 %v1409_v24 }
 0x988   : > { %v1564_v21 = vpop.eup %1563 }
 0x989   : > { %815 = vrot.lane.b32.xlu1 %v1564_v21, %s1795_s28 }
 0x98a   : > { %v1566_v22 = vpop.eup %1565 }
 0x98b   : > { %817 = vrot.lane.b32.xlu0 %v1566_v22, %s1795_s28  ;;  %v1568_v2 = vpop.eup %1567 }
 0x98c   : > { %v798_v25 = vadd.f32 1.0, %v1568_v2 }
 0x98e   : > { %1569 = vrcp.f32 %v798_v25 }
 0x99b   : > { %v1570_v28 = vpop.eup %1569 }
 0x99c   : > { %v812_v33 = vmul.f32 %v1570_v28, %v810_v27 }
 0x9fb   : > { %v816_v26 = vpop.permute.xlu1 %815 }
 0x9fd   : > { %v818_v23 = vpop.permute.xlu0 %817 }
 0x9fe   : > { %v819_v29 = vsel %vm516_vm1, %v816_v26, %v818_v23 }
 0x9ff   : > { %v821_v32 = vmul.f32 %v1570_v28, %v819_v29 }
 0xa01   : > { %823 = vrot.lane.b32.xlu1 %v821_v32, %s1796_s20 }
 0xa73   : > { %v824_v34 = vpop.permute.xlu1 %823 }
 0xa74   : > { %v826_v35 = vadd.f32 %v824_v34, %v812_v33 }
 0xa76   : > { %1571 = vtanh.f32 %v826_v35  ;;  %v905_v63 = vrot.slane %v826_v35, 6 }
 0xa77   : > { %1573 = vpow2.f32 %v1410_v37 }
 0xa83   : > { %v1572_v36 = vpop.eup %1571 }
 0xa84   : > { %829 = vrot.lane.b32.xlu0 %v1572_v36, %s1797_s11  ;;  %v1574_v38 = vpop.eup %1573 }
 0xa85   : > { %v806_v39 = vadd.f32 1.0, %v1574_v38 }
 0xa87   : > { %1575 = vrcp.f32 %v806_v39 }
 0xa94   : > { %v1576_v40 = vpop.eup %1575 }
 0xaf6   : > { %v830_v41 = vpop.permute.xlu0 %829 }
 0xaf7   : > { %v2144_v42 = vmul.f32 %v1576_v40, %v830_v41 }
 0xaf9   : > { %v839_v43 = vpack.c.bf16 %v2144_v42, %v2144_v42 }
 0xafb   : > { %v841_v44 = vrot.slane %v839_v43, 3 }
 0xafd   : > { %842 = vrot.lane.b32.xlu1 %v841_v44, %s1798_s10 }
 0xb6f   : > { %v843_v45 = vpop.permute.xlu1 %842 }
 0xb70   : > { %1411 = vmatmul.mubr.msk.bf16.vlgmr.msra.gmra.mxu1 %vm366_vm0, %v843_v45 }
 0xb71   : > { %1051 = vmatpush1.bf16.msra.mxu1 %v2026_v4  ;;  %1072 = vmatprep.mubr.bf16.mxu1 %v1794_v0 }
 0xb72   : > { %1052 = vmatprep.subr.bf16.mxu1 %v2030_v6 }
 0xb75   : > { %1053 = vmatpush1.bf16.msra.mxu1 %v2032_v8 }
 0xb76   : > { %1054 = vmatprep.subr.bf16.mxu1 %v2035_v10 }
 0xb79   : > { %1055 = vmatpush1.bf16.msra.mxu1 %v2038_v12 }
 0xc30   : > { %v881_v46 = vpop.f32.mrf.mxu1 }
 0xc31   : > { %v888_v48 = vadd.f32 %v881_v46, %v2075_v31 }
 0xc32   : > { %v883_v49 = vpop.f32.mrf.mxu1 }
 0xc33   : > { %1577 = vtanh.f32 %v888_v48  ;;  %v889_v50 = vadd.f32 %v883_v49, %v2158_v47  ;;  %v1412_v57 = vmul.f32 -1.442695, %v888_v48 }
 0xc34   : > { %v885_v51 = vpop.f32.mrf.mxu1 }
 0xc35   : > { %1579 = vtanh.f32 %v889_v50  ;;  %v1413_v11 = vmul.f32 -1.442695, %v889_v50 }
 0xc36   : > { %v886_v53 = vpop.f32.mrf.mxu1  ;;  %1581 = vpow2.f32 %v1412_v57 }
 0xc40   : > { %v1578_v54 = vpop.eup %1577 }
 0xc41   : > { %910 = vrot.lane.b32.xlu0 %v1578_v54, %s1795_s28 }
 0xc42   : > { %v1580_v56 = vpop.eup %1579 }
 0xc43   : > { %912 = vrot.lane.b32.xlu1 %v1580_v56, %s1795_s28  ;;  %v1582_v58 = vpop.eup %1581 }
 0xc44   : > { %v893_v20 = vadd.f32 1.0, %v1582_v58 }
 0xc46   : > { %1583 = vrcp.f32 %v893_v20 }
 0xc53   : > { %v1584_v60 = vpop.eup %1583 }
 0xc54   : > { %v907_v1 = vmul.f32 %v1584_v60, %v905_v63 }
 0xcb3   : > { %v911_v55 = vpop.permute.xlu0 %910 }
 0xcb5   : > { %v913_v59 = vpop.permute.xlu1 %912 }
 0xcb6   : > { %v914_v61 = vsel %vm516_vm1, %v911_v55, %v913_v59 }
 0xcb7   : > { %v916_v62 = vmul.f32 %v1584_v60, %v914_v61 }
 0xcb9   : > { %918 = vrot.lane.b32.xlu0 %v916_v62, %s1796_s20 }
 0xd2b   : > { %v919_v5 = vpop.permute.xlu0 %918 }
 0xd2c   : > { %v921_v7 = vadd.f32 %v919_v5, %v907_v1 }
 0xd2e   : > { %1585 = vtanh.f32 %v921_v7  ;;  %v1004_v34 = vrot.slane %v921_v7, 6 }
 0xd2f   : > { %1587 = vpow2.f32 %v1413_v11 }
 0xd3b   : > { %v1586_v9 = vpop.eup %1585 }
 0xd3c   : > { %924 = vrot.lane.b32.xlu1 %v1586_v9, %s1797_s11  ;;  %v1588_v13 = vpop.eup %1587 }
 0xd3d   : > { %v901_v14 = vadd.f32 1.0, %v1588_v13 }
 0xd3f   : > { %1589 = vrcp.f32 %v901_v14 }
 0xd4c   : > { %v1590_v15 = vpop.eup %1589 }
 0xdae   : > { %v925_v16 = vpop.permute.xlu1 %924 }
 0xdaf   : > { %v2167_v17 = vmul.f32 %v1590_v15, %v925_v16 }
 0xdb1   : > { %v933_v18 = vpack.c.bf16 %v2167_v17, %v2167_v17 }
 0xdb3   : > { %935 = vrot.lane.b32.xlu0 %v933_v18, %s1798_s10 }
 0xe25   : > { %v936_v19 = vpop.permute.xlu0 %935 }
 0xe26   : > { %1414 = vmatmul.mubr.msk.bf16.vlgmr.msra.gmra.mxu0 %vm366_vm0, %v936_v19 }
 0xe27   : > { %1151 = vmatpush1.bf16.msra.mxu0 %v2026_v4  ;;  %1172 = vmatprep.mubr.bf16.mxu0 %v1794_v0 }
 0xe28   : > { %1152 = vmatprep.subr.bf16.mxu0 %v2030_v6 }
 0xe2b   : > { %1153 = vmatpush1.bf16.msra.mxu0 %v2032_v8 }
 0xe2c   : > { %1154 = vmatprep.subr.bf16.mxu0 %v2035_v10 }
 0xe2f   : > { %1155 = vmatpush1.bf16.msra.mxu0 %v2038_v12 }
 0xee6   : > { %v974_v21 = vpop.f32.mrf.mxu0 }
 0xee7   : > { %v983_v22 = vrot.slane %v974_v21, 6 }
 0xee8   : > { %v976_v24 = vpop.f32.mrf.mxu0 }
 0xee9   : > { %v987_v2 = vadd.f32 %v983_v22, %v2075_v31  ;;  %v984_v25 = vrot.slane %v976_v24, 6 }
 0xeea   : > { %v978_v26 = vpop.f32.mrf.mxu0 }
 0xeeb   : > { %1591 = vtanh.f32 %v987_v2  ;;  %v988_v4 = vadd.f32 %v984_v25, %v2158_v47  ;;  %v1415_v8 = vmul.f32 -1.442695, %v987_v2 }
 0xeec   : > { %v979_v23 = vpop.f32.mrf.mxu0 }
 0xeed   : > { %1593 = vtanh.f32 %v988_v4  ;;  %v1416_v39 = vmul.f32 -1.442695, %v988_v4 }
 0xeee   : > { %1595 = vpow2.f32 %v1415_v8 }
 0xef8   : > { %v1592_v0 = vpop.eup %1591 }
 0xef9   : > { %1009 = vrot.lane.b32.xlu1 %v1592_v0, %s1795_s28 }
 0xefa   : > { %v1594_v6 = vpop.eup %1593 }
 0xefb   : > { %1011 = vrot.lane.b32.xlu0 %v1594_v6, %s1795_s28  ;;  %v1596_v10 = vpop.eup %1595 }
 0xefc   : > { %v992_v12 = vadd.f32 1.0, %v1596_v10 }
 0xefe   : > { %1597 = vrcp.f32 %v992_v12 }
 0xf0b   : > { %v1598_v32 = vpop.eup %1597 }
 0xf0c   : > { %v1006_v35 = vmul.f32 %v1598_v32, %v1004_v34 }
 0xf6b   : > { %v1010_v28 = vpop.permute.xlu1 %1009 }
 0xf6d   : > { %v1012_v29 = vpop.permute.xlu0 %1011 }
 0xf6e   : > { %v1013_v27 = vsel %vm516_vm1, %v1010_v28, %v1012_v29 }
 0xf6f   : > { %v1015_v33 = vmul.f32 %v1598_v32, %v1013_v27 }
 0xf71   : > { %1017 = vrot.lane.b32.xlu1 %v1015_v33, %s1796_s20 }
 0xfe3   : > { %v1018_v36 = vpop.permute.xlu1 %1017 }
 0xfe4   : > { %v1020_v37 = vadd.f32 %v1018_v36, %v1006_v35 }
 0xfe6   : > { %1599 = vtanh.f32 %v1020_v37  ;;  %v1104_v11 = vrot.slane %v1020_v37, 6 }
 0xfe7   : > { %1601 = vpow2.f32 %v1416_v39 }
 0xff3   : > { %v1600_v38 = vpop.eup %1599 }
 0xff4   : > { %1023 = vrot.lane.b32.xlu0 %v1600_v38, %s1797_s11  ;;  %v1602_v40 = vpop.eup %1601 }
 0xff5   : > { %v1000_v41 = vadd.f32 1.0, %v1602_v40 }
 0xff7   : > { %1603 = vrcp.f32 %v1000_v41 }
0x1004   : > { %v1604_v43 = vpop.eup %1603 }
0x1066   : > { %v1024_v44 = vpop.permute.xlu0 %1023 }
0x1067   : > { %v2186_v45 = vmul.f32 %v1604_v43, %v1024_v44 }
0x1069   : > { %v1032_v46 = vpack.c.bf16 %v2186_v45, %v2186_v45 }
0x106b   : > { %v1034_v48 = vrot.slane %v1032_v46, 1 }
0x106d   : > { %1035 = vrot.lane.b32.xlu1 %v1034_v48, %s1798_s10 }
0x10df   : > { %v1036_v49 = vpop.permute.xlu1 %1035 }
0x10e0   : > { %1417 = vmatmul.mubr.msk.bf16.vlgmr.msra.gmra.mxu1 %vm366_vm0, %v1036_v49 }
0x11a0   : > { %v1074_v50 = vpop.f32.mrf.mxu1 }
0x11a1   : > { %v1083_v51 = vrot.slane %v1074_v50, 4 }
0x11a2   : > { %v1076_v53 = vpop.f32.mrf.mxu1 }
0x11a3   : > { %v1087_v54 = vadd.f32 %v1083_v51, %v2075_v31  ;;  %v1084_v56 = vrot.slane %v1076_v53, 4 }
0x11a4   : > { %v1078_v57 = vpop.f32.mrf.mxu1 }
0x11a5   : > { %1605 = vtanh.f32 %v1087_v54  ;;  %v1088_v58 = vadd.f32 %v1084_v56, %v2158_v47  ;;  %v1418_v60 = vmul.f32 -1.442695, %v1087_v54 }
0x11a6   : > { %v1079_v20 = vpop.f32.mrf.mxu1 }
0x11a7   : > { %1607 = vtanh.f32 %v1088_v58  ;;  %v1419_v18 = vmul.f32 -1.442695, %v1088_v58 }
0x11a8   : > { %1609 = vpow2.f32 %v1418_v60 }
0x11b2   : > { %v1606_v55 = vpop.eup %1605 }
0x11b3   : > { %1109 = vrot.lane.b32.xlu0 %v1606_v55, %s1795_s28 }
0x11b4   : > { %v1608_v59 = vpop.eup %1607 }
0x11b5   : > { %1111 = vrot.lane.b32.xlu1 %v1608_v59, %s1795_s28  ;;  %v1610_v61 = vpop.eup %1609 }
0x11b6   : > { %v1092_v62 = vadd.f32 1.0, %v1610_v61 }
0x11b8   : > { %1611 = vrcp.f32 %v1092_v62 }
0x11c5   : > { %v1612_v5 = vpop.eup %1611 }
0x11c6   : > { %v1106_v13 = vmul.f32 %v1612_v5, %v1104_v11 }
0x1225   : > { %v1110_v63 = vpop.permute.xlu0 %1109 }
0x1227   : > { %v1112_v1 = vpop.permute.xlu1 %1111 }
0x1228   : > { %v1113_v7 = vsel %vm516_vm1, %v1110_v63, %v1112_v1 }
0x1229   : > { %v1115_v9 = vmul.f32 %v1612_v5, %v1113_v7 }
0x122b   : > { %1117 = vrot.lane.b32.xlu0 %v1115_v9, %s1796_s20 }
0x129d   : > { %v1118_v14 = vpop.permute.xlu0 %1117 }
0x129e   : > { %v1120_v15 = vadd.f32 %v1118_v14, %v1106_v13 }
0x12a0   : > { %1613 = vtanh.f32 %v1120_v15  ;;  %v1204_v39 = vrot.slane %v1120_v15, 6 }
0x12a1   : > { %1615 = vpow2.f32 %v1419_v18 }
0x12ad   : > { %v1614_v16 = vpop.eup %1613 }
0x12ae   : > { %1123 = vrot.lane.b32.xlu1 %v1614_v16, %s1797_s11  ;;  %v1616_v19 = vpop.eup %1615 }
0x12af   : > { %v1100_v21 = vadd.f32 1.0, %v1616_v19 }
0x12b1   : > { %1617 = vrcp.f32 %v1100_v21 }
0x12be   : > { %v1618_v22 = vpop.eup %1617 }
0x1320   : > { %v1124_v24 = vpop.permute.xlu1 %1123 }
0x1321   : > { %v1126_v2 = vmul.f32 %v1618_v22, %v1124_v24 }
0x1323   : > { %v1132_v25 = vpack.c.bf16 %v1126_v2, %v1126_v2 }
0x1325   : > { %v1134_v26 = vrot.slane %v1132_v25, 2 }
0x1327   : > { %1135 = vrot.lane.b32.xlu0 %v1134_v26, %s1798_s10 }
0x1399   : > { %v1136_v4 = vpop.permute.xlu0 %1135 }
0x139a   : > { %1420 = vmatmul.mubr.msk.bf16.vlgmr.msra.gmra.mxu0 %vm366_vm0, %v1136_v4 }
0x145a   : > { %v1174_v23 = vpop.f32.mrf.mxu0 }
0x145b   : > { %v1183_v0 = vrot.slane %v1174_v23, 2 }
0x145c   : > { %v1176_v6 = vpop.f32.mrf.mxu0 }
0x145d   : > { %v1187_v8 = vadd.f32 %v1183_v0, %v2075_v31  ;;  %v1184_v10 = vrot.slane %v1176_v6, 2 }
0x145e   : > { %v1178_v12 = vpop.f32.mrf.mxu0 }
0x145f   : > { %1619 = vtanh.f32 %v1187_v8  ;;  %v1188_v28 = vadd.f32 %v1184_v10, %v2158_v47  ;;  %v1421_v33 = vmul.f32 -1.442695, %v1187_v8 }
0x1460   : > { %v1179_v29 = vpop.f32.mrf.mxu0 }
0x1461   : > { %1621 = vtanh.f32 %v1188_v28  ;;  %v1422_v48 = vmul.f32 -1.442695, %v1188_v28 }
0x1462   : > { %1623 = vpow2.f32 %v1421_v33 }
0x146c   : > { %v1620_v32 = vpop.eup %1619 }
0x146d   : > { %1209 = vrot.lane.b32.xlu1 %v1620_v32, %s1795_s28 }
0x146e   : > { %v1622_v27 = vpop.eup %1621 }
0x146f   : > { %1211 = vrot.lane.b32.xlu0 %v1622_v27, %s1795_s28  ;;  %v1624_v34 = vpop.eup %1623 }
0x1470   : > { %v1192_v35 = vadd.f32 1.0, %v1624_v34 }
0x1472   : > { %1625 = vrcp.f32 %v1192_v35 }
0x147f   : > { %v1626_v37 = vpop.eup %1625 }
0x1480   : > { %v1206_v40 = vmul.f32 %v1626_v37, %v1204_v39 }
0x14df   : > { %v1210_v31 = vpop.permute.xlu1 %1209 }
0x14e1   : > { %v1212_v36 = vpop.permute.xlu0 %1211 }
0x14e2   : > { %v1213_v38 = vsel %vm516_vm1, %v1210_v31, %v1212_v36 }
0x14e3   : > { %v1215_v47 = vmul.f32 %v1626_v37, %v1213_v38 }
0x14e5   : > { %1217 = vrot.lane.b32.xlu1 %v1215_v47, %s1796_s20 }
0x14e9   : > { %532 = vrot.lane.b32.xlu1 %v2082_v52, %s1798_s10 }
0x14ed   : > { %733 = vrot.lane.b32.xlu1 %v2124_v3, %s1798_s10 }
0x14f1   : > { %929 = vrot.lane.b32.xlu1 %v2167_v17, %s1798_s10 }
0x14f5   : > { %1128 = vrot.lane.b32.xlu1 %v1126_v2, %s1798_s10 }
0x1557   : > { %v1218_v41 = vpop.permute.xlu1 %1217 }
0x1558   : > { %v1220_v43 = vadd.f32 %v1218_v41, %v1206_v40 }
0x155a   : > { %1627 = vtanh.f32 %v1220_v43 }
0x155b   : > { %v533_v44 = vpop.permute.xlu1 %532  ;;  %1629 = vpow2.f32 %v1422_v48 }
0x155c   : > { %536 = vst.msk [vmem:[%s2215_s24] sm:$0x3] %vm535_vm2, %v533_v44 }
0x155f   : > { %v734_v52 = vpop.permute.xlu1 %733 }
0x1560   : > { %737 = vst.msk [vmem:[%s2215_s24] sm:$0x30] %vm736_vm3, %v734_v52 }
0x1563   : > { %v930_v3 = vpop.permute.xlu1 %929 }
0x1564   : > { %932 = vst.msk [vmem:[%s2215_s24 + $0x8] sm:$0x3] %vm535_vm2, %v930_v3 }
0x1567   : > { %v1628_v17 = vpop.eup %1627  ;;  %v1129_v46 = vpop.permute.xlu1 %1128 }
0x1568   : > { %1131 = vst.msk [vmem:[%s2215_s24 + $0x8] sm:$0x30] %vm736_vm3, %v1129_v46  ;;  %1223 = vrot.lane.b32.xlu0 %v1628_v17, %s1797_s11  ;;  %v1630_v49 = vpop.eup %1629 }
0x1569   : > { %v1200_v50 = vadd.f32 1.0, %v1630_v49 }
0x156b   : > { %1631 = vrcp.f32 %v1200_v50 }
0x156c   : > { %632 = vrot.lane.b32.xlu0 %v2104_v30, %s1798_s10 }
0x1570   : > { %834 = vrot.lane.b32.xlu0 %v2144_v42, %s1798_s10 }
0x1574   : > { %1028 = vrot.lane.b32.xlu0 %v2186_v45, %s1798_s10 }
0x1578   : > { %v1632_v51 = vpop.eup %1631 }
0x15da   : > { %v1224_v53 = vpop.permute.xlu0 %1223 }
0x15db   : > { %v1226_v54 = vmul.f32 %v1632_v51, %v1224_v53 }
0x15dd   : > { %1228 = vrot.lane.b32.xlu0 %v1226_v54, %s1798_s10 }
0x15de   : > { %v633_v30 = vpop.permute.xlu0 %632 }
0x15df   : > { %636 = vst.msk [vmem:[%s2215_s24] sm:$0xc] %vm635_vm4, %v633_v30 }
0x15e2   : > { %v835_v42 = vpop.permute.xlu0 %834 }
0x15e3   : > { %838 = vst.msk [vmem:[%s2215_s24] sm:$0xc0] %vm837_vm5, %v835_v42 }
0x15e6   : > { %v1029_v45 = vpop.permute.xlu0 %1028 }
0x15e7   : > { %1031 = vst.msk [vmem:[%s2215_s24 + $0x8] sm:$0xc] %vm635_vm4, %v1029_v45 }
0x164f   : > { %v1229_v56 = vpop.permute.xlu0 %1228 }
0x1650   : > { %1231 = vst.msk [vmem:[%s2215_s24 + $0x8] sm:$0xc0] %vm837_vm5, %v1229_v56 }
0x1651   : > { %1730 = shalt.err (!%p1727_p12)
}
0x1652   : > { %s1731_s6 = scalar_lea.hbm %s2239_s12, 256  ;;  %s1735_s1 = scalar_lea.hbm %s2287_s4, 512 }
0x1653   : > { %p1732_p0 = scmp.ne.s32.totalorder %s2239_s12, %s1731_s6  ;;  %p1736_p2 = scmp.lt.s32.totalorder %s2239_s12, %s2287_s4 }
0x1654   : > { %p1737_p5 = scmp.lt.s32.totalorder %s1735_s1, %s1731_s6 }
0x1655   : > { %p1733_p11 = pnand %p1732_p0, %p2312_p8 }
0x1656   : > { %p1738_p13 = por %p1737_p5, %p1736_p2 }
0x1657   : > { %p1734_p4 = pneg %p1733_p11 }
0x1659   : > { %p1739_p7 = pnand %p1738_p13, %p1734_p4 }
0x165b   : > { %1742 = shalt.err (!%p1739_p7)
}
0x165c   : > { %s1800_s11 = smov 128   ;;  %s1801_s10 = smov 8  }
0x165d   : > { %1441 = dma.vmem_to_hbm [thread:$0]  (%p2312_p8), %s2234_s9, 256, %s2239_s12, %s1233_s30, %s1800_s11, %s1800_s11, %s1801_s10  }
0x165e PF: > { %s1261_s0 = sand.u32 1, %s1773_s15   ;;  %p2313_p10 = scmp.ne.s32.totalorder %s2299_s27, 0 }
0x165f   : > { %p2314_p1 = scmp.ge.s32.totalorder %s1785_s18, 2  ;;  %s1262_s24 = scalar_lea.sflag [#allocation4], %s1261_s0 }
0x1661   : > { %p1454_p3 = pnand %p2314_p1, %p2313_p10 }
0x1663   : > { %p1455_p9 = pneg %p1454_p3 }
0x1665   : > { %1768 = dma.done.wait (%p1455_p9), %s1262_s24, 256  }
0x1666   : > { %1770 = vsyncadd (%p1455_p9), %s1262_s24, 4294967040  ;;  %s2315_s7 = sld [smem:[#allocation12_spill]]  ;;  %p20_p6 = scmp.ge.s32.totalorder %s1852_s21, 4  }
0x1667   : > { %s2316_s15 = smov %s1777_s16  ;;  %s2317_s16 = smov %s1781_s17 }
0x1668   : > { %s2319_s18 = smov %s1852_s21  ;;  %22 = sbr.rel (!%p20_p6) target bundleno = 10 (0xa), region = 108 }
0x166c   : > { %s2318_s17 = smov %s2315_s7 }
0x166d   :  { %1267 = vsyncpa [#allocation3], 1 }
0x166e   :  { %1269 = vsyncpa [#allocation3 + $0x1], 1 }
0x166f   :  { %1270 = vsyncpa [#allocation6], 1 }
0x1670   :  { %1272 = vsyncpa [#allocation6 + $0x1], 1 }
0x1671   :  { %1273 = vsyncpa [#allocation4], 1 }
0x1672   :  { %1275 = vsyncpa [#allocation4 + $0x1], 1 }

</bundles_post_ra>
